<compile_context>
chip_gen: v5e
topology: v5e:2x2
jax: 0.10.0
libtpu: 0.0.40
codegen_flags: <defaults>
</compile_context>

<pallas_src>
import functools

import jax
import jax.numpy as jnp
from jax.experimental import pallas as pl
from jax.experimental.pallas import tpu as pltpu


def _round_up(x, m):
    return ((x + m - 1) // m) * m


def _device_kind():
    try:
        return jax.devices()[0].device_kind.lower()
    except Exception:
        return ""


def _default_matmul_dtype():
    # bf16-in / f32-acc matmul pays off where the MXU (not HBM) is the likely
    # critical unit: v5e (low MXU peak) and v7x (3.2 TB/s HBM).  v6e (and
    # unknown chips) stay f32 for strict parity; it is near HBM-bound there.
    kind = _device_kind()
    if ("v5" in kind) or ("v7" in kind):
        return jnp.bfloat16
    return jnp.float32


def _default_num_tensorcores():
    # v7x has 2 TensorCores per chip; v5e/v6e have 1.
    return 2 if "v7" in _device_kind() else 1


def _default_vmem_budget_bytes():
    # ~55% of physical VMEM (v5e/v6e: 128 MiB, v7x: 64 MiB per TensorCore).
    try:
        return int(pltpu.get_tpu_info().vmem_capacity_bytes * 0.55)
    except Exception:
        return 48 * 1024 * 1024


def prepare_scatter_linear_params(w_t, b, *, matmul_dtype=None):
    """Pad the Linear params ONCE at init time (not per forward call).

    w_t: (D, classes) weight, already transposed so the kernel runs x @ W_t + b.
    Returns (w_pad (D, Cpad), b_pad (1, Cpad) f32, classes) with Cpad a
    multiple of 128 so the MXU N-dim and the output stores are lane-dense.
    """
    d, classes = w_t.shape
    if matmul_dtype is None:
        matmul_dtype = _default_matmul_dtype()
    c_pad = _round_up(max(classes, 128), 128)
    w_pad = jnp.zeros((d, c_pad), matmul_dtype).at[:, :classes].set(
        w_t.astype(matmul_dtype))
    b_pad = jnp.zeros((1, c_pad), jnp.float32).at[0, :classes].set(
        b.astype(jnp.float32))
    return w_pad, b_pad, classes


def _scatter_linear_kernel(x_ref, w_ref, b_ref, o_ref, *,
                           num_groups, use_groupnorm, clip_norm, eps):
    # x_ref: (TN, D) f32, w_ref: (D, Cpad), b_ref: (1, Cpad) f32,
    # o_ref: (TN, Cpad) f32.
    x = x_ref[...].astype(jnp.float32)
    tn, d = x.shape

    sumsq = None
    if use_groupnorm:
        g = num_groups
        gs = d // g
        if gs % 128 == 0:
            # Sublane-dense 2-D view (tn*G, gs): lane-aligned (gs % 128 == 0),
            # so the relayout is cheap and stats vregs are not padded to 8
            # sublanes the way a (tn, G, gs) view with small G would be.
            xg = x.reshape(tn * g, gs)
            mean = jnp.mean(xg, axis=-1, keepdims=True)
            cent = xg - mean
            var = jnp.mean(cent * cent, axis=-1, keepdims=True)  # biased (torch parity)
            inv = jax.lax.rsqrt(var + eps)                        # EUP rsqrt
            x = (cent * inv).reshape(tn, d)
            if clip_norm is not None:
                # ||x_norm||^2 per sample = sum_g gs * var_g / (var_g + eps):
                # reuse the GroupNorm stats instead of re-reducing the tile.
                group_ss = (float(gs) * var) * (inv * inv)        # (tn*G, 1)
                sumsq = jnp.sum(group_ss.reshape(tn, g), axis=-1, keepdims=True)
        else:
            # General path for non-lane-aligned group size.
            xg = x.reshape(tn, g, gs)
            mean = jnp.mean(xg, axis=-1, keepdims=True)
            cent = xg - mean
            var = jnp.mean(cent * cent, axis=-1, keepdims=True)
            inv = jax.lax.rsqrt(var + eps)
            x = (cent * inv).reshape(tn, d)
            if clip_norm is not None:
                group_ss = (float(gs) * var) * (inv * inv)        # (tn, G, 1)
                sumsq = jnp.sum(group_ss, axis=1).reshape(tn, 1)

    if clip_norm is not None:
        if sumsq is None:  # no GroupNorm: must reduce the tile directly
            sumsq = jnp.sum(x * x, axis=-1, keepdims=True)
        # clamp(clip_norm / ||x||, max=1); rsqrt keeps the divide on the EUP.
        scale = jnp.minimum(jnp.float32(clip_norm) * jax.lax.rsqrt(sumsq), 1.0)
        x = x * scale

    # bf16-in / f32-acc when the weight is stored bf16; no-op cast otherwise.
    xm = x.astype(w_ref.dtype)
    y = jnp.dot(xm, w_ref[...], preferred_element_type=jnp.float32) + b_ref[...]
    o_ref[...] = y.astype(o_ref.dtype)


def scatter_linear_forward(x_nchw, w_pad, b_pad, classes, *,
                           num_groups=None, input_norm=None, clip_norm=None,
                           block_n=1024, eps=1e-5,
                           vmem_budget_bytes=None, num_tensorcores=None):
    """x_nchw: (N, K, h, w); w_pad/b_pad from prepare_scatter_linear_params."""
    n, k, h, w = x_nchw.shape
    d = k * h * w
    c_pad = w_pad.shape[1]
    assert w_pad.shape[0] == d
    assert b_pad.shape == (1, c_pad)
    assert classes <= c_pad

    # TODO(synk): bn_stats-based `standardize` input-norm path not implemented
    # (only Identity / GroupNorm norms are supported here).
    use_groupnorm = (input_norm == 'GroupNorm')
    if use_groupnorm:
        assert num_groups is not None and k % num_groups == 0

    if vmem_budget_bytes is None:
        vmem_budget_bytes = _default_vmem_budget_bytes()
    if num_tensorcores is None:
        num_tensorcores = _default_num_tensorcores()

    # Flatten exactly like torch's x.reshape(x.size(0), -1) on NCHW (no copy).
    x2d = x_nchw.reshape(n, d).astype(jnp.float32)

    w_itemsize = jnp.dtype(w_pad.dtype).itemsize
    bf16_matmul = (w_pad.dtype == jnp.bfloat16)

    kernel = functools.partial(
        _scatter_linear_kernel,
        num_groups=num_groups if use_groupnorm else 1,
        use_groupnorm=use_groupnorm,
        clip_norm=clip_norm,
        eps=eps,
    )

    def build_call(w_buffers):
        # ---- VMEM accounting -------------------------------------------------
        # Grid-invariant weight + bias: w_buffers pipeline copies each.
        fixed = w_buffers * (w_itemsize * d * c_pad + 4 * c_pad)
        # Per batch row: double-buffered f32 x tile and f32 out tile, ~3 f32
        # (bn, D) elementwise intermediates of the GroupNorm/clip chain, plus
        # the bf16 copy of x when the matmul runs in bf16.
        per_row = 4 * (2 * d + 2 * c_pad) + 3 * 4 * d + (2 * d if bf16_matmul else 0)
        slack = 4 * 1024 * 1024
        bn_cap = max(8, ((max(vmem_budget_bytes - fixed - slack, 0) // per_row) // 8) * 8)
        bn_max = max(8, min(block_n, bn_cap))

        # ---- batch tile choice (generation-aware) ----------------------------
        if num_tensorcores >= 2 and n > 16:
            # Balanced, even grid-step count so both TensorCores stay busy.
            steps = 2 * max(1, -(-n // (2 * bn_max)))
            bn = min(bn_max, _round_up(-(-n // steps), 8))
        else:
            # Single TensorCore: keep one full-batch tile when it fits VMEM; a
            # forced split only adds per-step overhead and shrinks the MXU M-dim.
            bn = min(bn_max, _round_up(n, 8))
        bn = max(bn, 8)
        grid_n = pl.cdiv(n, bn)

        vmem_limit = int(fixed + per_row * bn + slack)

        if w_buffers == 1:
            # Weight/bias never change across grid steps: single-buffer them so
            # the freed VMEM can go to a larger batch tile.
            w_spec = pl.BlockSpec((d, c_pad), lambda i: (0, 0),
                                  pipeline_mode=pl.Buffered(1))
            b_spec = pl.BlockSpec((1, c_pad), lambda i: (0, 0),
                                  pipeline_mode=pl.Buffered(1))
        else:
            w_spec = pl.BlockSpec((d, c_pad), lambda i: (0, 0))
            b_spec = pl.BlockSpec((1, c_pad), lambda i: (0, 0))

        return pl.pallas_call(
            kernel,
            out_shape=jax.ShapeDtypeStruct((n, c_pad), jnp.float32),
            grid_spec=pltpu.PrefetchScalarGridSpec(
                num_scalar_prefetch=0,
                grid=(grid_n,),
                in_specs=[
                    pl.BlockSpec((bn, d), lambda i: (i, 0)),
                    w_spec,
                    b_spec,
                ],
                out_specs=pl.BlockSpec((bn, c_pad), lambda i: (i, 0)),
            ),
            compiler_params=pltpu.CompilerParams(
                dimension_semantics=("parallel",),
                vmem_limit_bytes=vmem_limit),
        )

    # TODO(synk): for very large D / classes where the full weight cannot stay
    # VMEM-resident, add a D-reduction grid axis with an f32 accumulator
    # instead of letting the batch tile collapse toward 8 rows.
    try:
        out = build_call(w_buffers=1)(x2d, w_pad, b_pad)
    except Exception:
        # pl.Buffered(1) not supported by this jax version / backend: fall back
        # to the default double-buffered grid-invariant weight and bias.
        out = build_call(w_buffers=2)(x2d, w_pad, b_pad)

    return out[:, :classes]


def _reference_forward(x_nchw, w_t, b, *, num_groups, input_norm, clip_norm, eps=1e-5):
    n, k, h, w = x_nchw.shape
    x = x_nchw.astype(jnp.float32)
    if input_norm == 'GroupNorm':
        xg = x.reshape(n, num_groups, -1)
        mean = jnp.mean(xg, axis=-1, keepdims=True)
        var = jnp.mean((xg - mean) ** 2, axis=-1, keepdims=True)
        x = ((xg - mean) / jnp.sqrt(var + eps)).reshape(n, k, h, w)
    if clip_norm is not None:
        nrm = jnp.linalg.norm(x.reshape(n, -1), axis=-1)
        scale = jnp.minimum(clip_norm / nrm, 1.0)
        x = x * scale.reshape(-1, 1, 1, 1)
    x = x.reshape(n, -1)
    return x @ w_t + b


if __name__ == "__main__":
    # Small shapes consistent with ScatterLinear(in_channels=K, hw_dims=(h, w)).
    N, K, H, W = 2, 4, 16, 16      # x: (2, 4, 16, 16)  -> D = 1024
    CLASSES = 10
    NUM_GROUPS = 2
    CLIP_NORM = 1.0
    D = K * H * W

    key = jax.random.PRNGKey(0)
    kx, kw, kb = jax.random.split(key, 3)

    x = jax.random.normal(kx, (N, K, H, W), dtype=jnp.float32)

    # nn.Linear(D, classes) init: U(-1/sqrt(D), 1/sqrt(D)); weight stored
    # transposed as (D, classes) so the kernel computes x @ W_t + b.
    bound = 1.0 / (D ** 0.5)
    w_t = jax.random.uniform(kw, (D, CLASSES), minval=-bound, maxval=bound,
                             dtype=jnp.float32)
    b = jax.random.uniform(kb, (CLASSES,), minval=-bound, maxval=bound,
                           dtype=jnp.float32)

    # Pad / dtype-convert the Linear params once (init time, not per call).
    w_pad, b_pad, classes = prepare_scatter_linear_params(w_t, b)

    out = scatter_linear_forward(
        x, w_pad, b_pad, classes,
        num_groups=NUM_GROUPS, input_norm='GroupNorm', clip_norm=CLIP_NORM)
    out = jax.block_until_ready(out)

    ref = _reference_forward(
        x, w_t, b,
        num_groups=NUM_GROUPS, input_norm='GroupNorm', clip_norm=CLIP_NORM)

    # bf16-input matmul generations (v5e/v7x) need a looser parity tolerance.
    tol = 1e-4 if w_pad.dtype == jnp.float32 else 2e-2
    assert out.shape == (N, CLASSES), out.shape
    assert jnp.allclose(out, ref, atol=tol, rtol=tol), (out, ref)
    print("KERNEL_OK")
</pallas_src>

<mosaic_0001>
module attributes {stable_mosaic.version = 11 : i64} {
  func.func @_scatter_linear_kernel(%arg0: i32, %arg1: memref<8x1024xf32, #tpu.memory_space<vmem>>, %arg2: memref<1024x128xf32, #tpu.memory_space<vmem>>, %arg3: memref<1x128xf32, #tpu.memory_space<vmem>>, %arg4: memref<8x128xf32, #tpu.memory_space<vmem>>) attributes {dimension_semantics = [#tpu.dimension_semantics<parallel>], iteration_bounds = array<i64: 1>, scalar_prefetch = 0 : i64, scratch_operands = 0 : i64, tpu.core_type = #tpu.core_type<tc>, window_params = [{transform_indices = @transform_0, window_bounds = array<i64: 8, 1024>}, {pipeline_mode = #tpu.pipeline_mode<synchronous>, transform_indices = @transform_1, window_bounds = array<i64: 1024, 128>}, {pipeline_mode = #tpu.pipeline_mode<synchronous>, transform_indices = @transform_2, window_bounds = array<i64: 1, 128>}, {transform_indices = @transform_3, window_bounds = array<i64: 8, 128>}]} {
    %c0 = arith.constant 0 : index
    %c0_0 = arith.constant 0 : index
    %0 = vector.load %arg1[%c0, %c0_0] : memref<8x1024xf32, #tpu.memory_space<vmem>>, vector<8x1024xf32>
    %1 = vector.shape_cast %0 : vector<8x1024xf32> to vector<16x512xf32>
    %cst = arith.constant dense<0.000000e+00> : vector<16xf32>
    %2 = vector.multi_reduction <add>, %1, %cst [1] : vector<16x512xf32> to vector<16xf32>
    %3 = vector.shape_cast %2 : vector<16xf32> to vector<16x1xf32>
    %cst_1 = arith.constant 5.120000e+02 : f32
    %4 = vector.broadcast %cst_1 : f32 to vector<16x1xf32>
    %5 = arith.divf %3, %4 : vector<16x1xf32>
    %6 = vector.broadcast %5 : vector<16x1xf32> to vector<16x512xf32>
    %7 = arith.subf %1, %6 : vector<16x512xf32>
    %8 = arith.mulf %7, %7 : vector<16x512xf32>
    %cst_2 = arith.constant dense<0.000000e+00> : vector<16xf32>
    %9 = vector.multi_reduction <add>, %8, %cst_2 [1] : vector<16x512xf32> to vector<16xf32>
    %10 = vector.shape_cast %9 : vector<16xf32> to vector<16x1xf32>
    %cst_3 = arith.constant 5.120000e+02 : f32
    %11 = vector.broadcast %cst_3 : f32 to vector<16x1xf32>
    %12 = arith.divf %10, %11 : vector<16x1xf32>
    %cst_4 = arith.constant 9.99999974E-6 : f32
    %13 = vector.broadcast %cst_4 : f32 to vector<16x1xf32>
    %14 = arith.addf %12, %13 : vector<16x1xf32>
    %15 = math.rsqrt %14 : vector<16x1xf32>
    %16 = vector.broadcast %15 : vector<16x1xf32> to vector<16x512xf32>
    %17 = arith.mulf %7, %16 : vector<16x512xf32>
    %18 = vector.shape_cast %17 : vector<16x512xf32> to vector<8x1024xf32>
    %cst_5 = arith.constant 5.120000e+02 : f32
    %19 = vector.broadcast %cst_5 : f32 to vector<16x1xf32>
    %20 = arith.mulf %19, %12 : vector<16x1xf32>
    %21 = arith.mulf %15, %15 : vector<16x1xf32>
    %22 = arith.mulf %20, %21 : vector<16x1xf32>
    %23 = vector.shape_cast %22 : vector<16x1xf32> to vector<8x2xf32>
    %cst_6 = arith.constant dense<0.000000e+00> : vector<8xf32>
    %24 = vector.multi_reduction <add>, %23, %cst_6 [1] : vector<8x2xf32> to vector<8xf32>
    %25 = vector.shape_cast %24 : vector<8xf32> to vector<8x1xf32>
    %26 = math.rsqrt %25 : vector<8x1xf32>
    %cst_7 = arith.constant 1.000000e+00 : f32
    %27 = vector.broadcast %cst_7 : f32 to vector<8x1xf32>
    %28 = arith.mulf %27, %26 : vector<8x1xf32>
    %cst_8 = arith.constant 1.000000e+00 : f32
    %29 = vector.broadcast %cst_8 : f32 to vector<8x1xf32>
    %30 = arith.minimumf %28, %29 : vector<8x1xf32>
    %31 = vector.broadcast %30 : vector<8x1xf32> to vector<8x1024xf32>
    %32 = arith.mulf %18, %31 : vector<8x1024xf32>
    %c0_9 = arith.constant 0 : index
    %c0_10 = arith.constant 0 : index
    %33 = vector.load %arg2[%c0_9, %c0_10] : memref<1024x128xf32, #tpu.memory_space<vmem>>, vector<1024x128xf32>
    %cst_11 = arith.constant dense<0.000000e+00> : vector<8x128xf32>
    %34 = tpu.matmul %32, %33, %cst_11 {dimension_numbers = #tpu.dot_dimension_numbers<[1], [0], [0], [1], [0, 0, 1, 1], [], []>} : vector<8x1024xf32>, vector<1024x128xf32>, vector<8x128xf32> -> vector<8x128xf32>
    %c0_12 = arith.constant 0 : index
    %c0_13 = arith.constant 0 : index
    %35 = vector.load %arg3[%c0_12, %c0_13] : memref<1x128xf32, #tpu.memory_space<vmem>>, vector<1x128xf32>
    %36 = vector.broadcast %35 : vector<1x128xf32> to vector<8x128xf32>
    %37 = arith.addf %34, %36 : vector<8x128xf32>
    %c0_14 = arith.constant 0 : index
    %c0_15 = arith.constant 0 : index
    %38 = vector.load %arg4[%c0_14, %c0_15] : memref<8x128xf32, #tpu.memory_space<vmem>>, vector<8x128xf32>
    tpu.vector_store %arg4[%c0_14, %c0_15], %37 {strides = array<i32>} : memref<8x128xf32, #tpu.memory_space<vmem>>, vector<8x128xf32>,
    return
  }
  func.func @transform_0(%arg0: i32) -> (i32, i32) {
    %c0_i32 = arith.constant 0 : i32
    %c0_i32_0 = arith.constant 0 : i32
    return %arg0, %c0_i32 : i32, i32
  }
  func.func @transform_1(%arg0: i32) -> (i32, i32) {
    %c0_i32 = arith.constant 0 : i32
    %c0_i32_0 = arith.constant 0 : i32
    %c0_i32_1 = arith.constant 0 : i32
    return %c0_i32, %c0_i32_0 : i32, i32
  }
  func.func @transform_2(%arg0: i32) -> (i32, i32) {
    %c0_i32 = arith.constant 0 : i32
    %c0_i32_0 = arith.constant 0 : i32
    %c0_i32_1 = arith.constant 0 : i32
    return %c0_i32, %c0_i32_0 : i32, i32
  }
  func.func @transform_3(%arg0: i32) -> (i32, i32) {
    %c0_i32 = arith.constant 0 : i32
    %c0_i32_0 = arith.constant 0 : i32
    return %arg0, %c0_i32 : i32, i32
  }
}

module attributes {stable_mosaic.version = 11 : i64} {
  func.func @_scatter_linear_kernel(%arg0: i32, %arg1: memref<8x1024xf32, #tpu.memory_space<vmem>>, %arg2: memref<1024x128xf32, #tpu.memory_space<vmem>>, %arg3: memref<1x128xf32, #tpu.memory_space<vmem>>, %arg4: memref<8x128xf32, #tpu.memory_space<vmem>>) attributes {dimension_semantics = [#tpu.dimension_semantics<parallel>], iteration_bounds = array<i64: 1>, scalar_prefetch = 0 : i64, scratch_operands = 0 : i64, tpu.core_type = #tpu.core_type<tc>, window_params = [{transform_indices = @transform_0, window_bounds = array<i64: 8, 1024>}, {pipeline_mode = #tpu.pipeline_mode<synchronous>, transform_indices = @transform_1, window_bounds = array<i64: 1024, 128>}, {pipeline_mode = #tpu.pipeline_mode<synchronous>, transform_indices = @transform_2, window_bounds = array<i64: 1, 128>}, {transform_indices = @transform_3, window_bounds = array<i64: 8, 128>}]} {
    %c0 = arith.constant 0 : index
    %c0_0 = arith.constant 0 : index
    %0 = vector.load %arg1[%c0, %c0_0] : memref<8x1024xf32, #tpu.memory_space<vmem>>, vector<8x1024xf32>
    %1 = vector.shape_cast %0 : vector<8x1024xf32> to vector<16x512xf32>
    %cst = arith.constant dense<0.000000e+00> : vector<16xf32>
    %2 = vector.multi_reduction <add>, %1, %cst [1] : vector<16x512xf32> to vector<16xf32>
    %3 = vector.shape_cast %2 : vector<16xf32> to vector<16x1xf32>
    %cst_1 = arith.constant 5.120000e+02 : f32
    %4 = vector.broadcast %cst_1 : f32 to vector<16x1xf32>
    %5 = arith.divf %3, %4 : vector<16x1xf32>
    %6 = vector.broadcast %5 : vector<16x1xf32> to vector<16x512xf32>
    %7 = arith.subf %1, %6 : vector<16x512xf32>
    %8 = arith.mulf %7, %7 : vector<16x512xf32>
    %cst_2 = arith.constant dense<0.000000e+00> : vector<16xf32>
    %9 = vector.multi_reduction <add>, %8, %cst_2 [1] : vector<16x512xf32> to vector<16xf32>
    %10 = vector.shape_cast %9 : vector<16xf32> to vector<16x1xf32>
    %cst_3 = arith.constant 5.120000e+02 : f32
    %11 = vector.broadcast %cst_3 : f32 to vector<16x1xf32>
    %12 = arith.divf %10, %11 : vector<16x1xf32>
    %cst_4 = arith.constant 9.99999974E-6 : f32
    %13 = vector.broadcast %cst_4 : f32 to vector<16x1xf32>
    %14 = arith.addf %12, %13 : vector<16x1xf32>
    %15 = math.rsqrt %14 : vector<16x1xf32>
    %16 = vector.broadcast %15 : vector<16x1xf32> to vector<16x512xf32>
    %17 = arith.mulf %7, %16 : vector<16x512xf32>
    %18 = vector.shape_cast %17 : vector<16x512xf32> to vector<8x1024xf32>
    %cst_5 = arith.constant 5.120000e+02 : f32
    %19 = vector.broadcast %cst_5 : f32 to vector<16x1xf32>
    %20 = arith.mulf %19, %12 : vector<16x1xf32>
    %21 = arith.mulf %15, %15 : vector<16x1xf32>
    %22 = arith.mulf %20, %21 : vector<16x1xf32>
    %23 = vector.shape_cast %22 : vector<16x1xf32> to vector<8x2xf32>
    %cst_6 = arith.constant dense<0.000000e+00> : vector<8xf32>
    %24 = vector.multi_reduction <add>, %23, %cst_6 [1] : vector<8x2xf32> to vector<8xf32>
    %25 = vector.shape_cast %24 : vector<8xf32> to vector<8x1xf32>
    %26 = math.rsqrt %25 : vector<8x1xf32>
    %cst_7 = arith.constant 1.000000e+00 : f32
    %27 = vector.broadcast %cst_7 : f32 to vector<8x1xf32>
    %28 = arith.mulf %27, %26 : vector<8x1xf32>
    %cst_8 = arith.constant 1.000000e+00 : f32
    %29 = vector.broadcast %cst_8 : f32 to vector<8x1xf32>
    %30 = arith.minimumf %28, %29 : vector<8x1xf32>
    %31 = vector.broadcast %30 : vector<8x1xf32> to vector<8x1024xf32>
    %32 = arith.mulf %18, %31 : vector<8x1024xf32>
    %c0_9 = arith.constant 0 : index
    %c0_10 = arith.constant 0 : index
    %33 = vector.load %arg2[%c0_9, %c0_10] : memref<1024x128xf32, #tpu.memory_space<vmem>>, vector<1024x128xf32>
    %cst_11 = arith.constant dense<0.000000e+00> : vector<8x128xf32>
    %34 = tpu.matmul %32, %33, %cst_11 {dimension_numbers = #tpu.dot_dimension_numbers<[1], [0], [0], [1], [0, 0, 1, 1], [], []>} : vector<8x1024xf32>, vector<1024x128xf32>, vector<8x128xf32> -> vector<8x128xf32>
    %c0_12 = arith.constant 0 : index
    %c0_13 = arith.constant 0 : index
    %35 = vector.load %arg3[%c0_12, %c0_13] : memref<1x128xf32, #tpu.memory_space<vmem>>, vector<1x128xf32>
    %36 = vector.broadcast %35 : vector<1x128xf32> to vector<8x128xf32>
    %37 = arith.addf %34, %36 : vector<8x128xf32>
    %c0_14 = arith.constant 0 : index
    %c0_15 = arith.constant 0 : index
    %38 = vector.load %arg4[%c0_14, %c0_15] : memref<8x128xf32, #tpu.memory_space<vmem>>, vector<8x128xf32>
    tpu.vector_store %arg4[%c0_14, %c0_15], %37 {strides = array<i32>} : memref<8x128xf32, #tpu.memory_space<vmem>>, vector<8x128xf32>,
    return
  }
  func.func @transform_0(%arg0: i32) -> (i32, i32) {
    %c0_i32 = arith.constant 0 : i32
    %c0_i32_0 = arith.constant 0 : i32
    return %arg0, %c0_i32 : i32, i32
  }
  func.func @transform_1(%arg0: i32) -> (i32, i32) {
    %c0_i32 = arith.constant 0 : i32
    %c0_i32_0 = arith.constant 0 : i32
    %c0_i32_1 = arith.constant 0 : i32
    return %c0_i32, %c0_i32_0 : i32, i32
  }
  func.func @transform_2(%arg0: i32) -> (i32, i32) {
    %c0_i32 = arith.constant 0 : i32
    %c0_i32_0 = arith.constant 0 : i32
    %c0_i32_1 = arith.constant 0 : i32
    return %c0_i32, %c0_i32_0 : i32, i32
  }
  func.func @transform_3(%arg0: i32) -> (i32, i32) {
    %c0_i32 = arith.constant 0 : i32
    %c0_i32_0 = arith.constant 0 : i32
    return %arg0, %c0_i32 : i32, i32
  }
}

</mosaic_0001>

<bundles_post_ra>
// kernel: tpu_custom_call.1
= control target key start
LH: loop header
LB: loop body
LE: loop exit
PB: predicated region body
PF: predicated region fallthrough
CT: control target
= control target key end

     0   :  { %8 = vsyncpa [#allocation3], 0  ;;  %s1341_s0 = inlined_call_operand.hbm [shape: f32[2,1024], index: 0, kind: input, shape index: {}]   ;;  %s1342_s1 = inlined_call_operand.hbm [shape: f32[1024,128], index: 1, kind: input, shape index: {}]   ;;  %s1343_s2 = inlined_call_operand.vmem [shape: f32[1,128], index: 2, kind: input, shape index: {}]   ;;  %s1344_s3 = inlined_call_operand.hbm [shape: f32[2,128], index: 3, kind: output, shape index: {}]  }
   0x1   :  { %9 = vsyncpa [#allocation6], 0 }
   0x2   :  { %10 = vsyncpa [#allocation4], 0 }
   0x3   :  { %14 = vsyncadd [#allocation3], 768  ;;  %s15_s14 = sshll.u32 %s1341_s0, 4  ;;  %s1075_s15 = smov [#allocation2]   ;;  %s16_s14 = int_to_ptr.hbm [resolvable:$true] %s15_s14 }
   0x4   :  { %s17_s16 = sshll.u32 %s1075_s15, 4  ;;  %s28_s19 = sshll.u32 %s1342_s1, 4  ;;  %s18_s16 = int_to_ptr.vmem [resolvable:$true] %s17_s16  ;;  %s29_s19 = int_to_ptr.hbm [resolvable:$true] %s28_s19 }
   0x5   :  { %s1076_s20 = smov 256   ;;  %s1077_s21 = smov 16  }
   0x6   :  { %23 = dma.hbm_to_vmem [thread:$0]  %s16_s14, 256, %s18_s16, [#allocation3], %s1076_s20, %s1076_s20, %s1077_s21  }
   0x7   :  { %s1078_s22 = smov [#allocation5]   ;;  %s1079_s24 = smov 128  }
   0x8   :  { %s30_s23 = sshll.u32 %s1078_s22, 4  ;;  %s1080_s25 = smov 8   ;;  %s31_s23 = int_to_ptr.vmem [resolvable:$true] %s30_s23 }
   0x9   :  { %36 = dma.hbm_to_vmem [thread:$0]  %s29_s19, 16384, %s31_s23, [#allocation6], %s1079_s24, %s1079_s24, %s1080_s25  }
   0xa   :  { %1069 = dma.done.wait [#allocation3], 1024  }
   0xb   :  { %1070 = vsyncadd [#allocation3], 4294966272 }
   0xc   :  { %1071 = dma.done.wait [#allocation6], 16384  }
   0xd   :  { %1072 = vsyncadd [#allocation6], 4294950912  ;;  %vm91_vm0 = vcmask 1040384   ;;  %vm93_vm1 = vcmask 1042434   ;;  %vm95_vm2 = vcmask 1041408   ;;  %vm97_vm3 = vcmask 1044484  }
   0xe   :  { %v1081_v0 = vmov 1935823168   ;;  %vm99_vm4 = vcmask 1046534   ;;  %vm101_vm5 = vcmask 1045508   ;;  %vm103_vm6 = vcmask 1043456   ;;  %v47_v2 = vld [vmem:[#allocation2] sm:$0xff] }
   0xf   :  { %v174_v1 = vunpack.c.l.s4 %v1081_v0  ;;  %vm105_vm7 = vcmask 1041409   ;;  %vm107_vm8 = vcmask 1043459   ;;  %vm109_vm9 = vcmask 1042433   ;;  %v48_v3 = vld [vmem:[#allocation2 + $0x8] sm:$0xff]  ;;  %v49_v4 = vld [vmem:[#allocation2 + $0x10] sm:$0xff]  ;;  %v50_v6 = vld [vmem:[#allocation2 + $0x18] sm:$0xff] }
  0x10   :  { %vm111_vm10 = vcmask 1045509   ;;  %vm113_vm11 = vcmask 1046528   ;;  %vm115_vm12 = vcmask 1046533   ;;  %vm117_vm13 = vcmask 1044481   ;;  %v51_v43 = vld [vmem:[#allocation2 + $0x20] sm:$0xff]  ;;  %v52_v48 = vld [vmem:[#allocation2 + $0x28] sm:$0xff] }
  0x11   :  { %v1118_v5 = vunpack.c.0.s8 %v174_v1  ;;  %v63_v7 = vrot.slane %v47_v2, 1  ;;  %v64_v8 = vrot.slane %v47_v2, 2  ;;  %v65_v9 = vrot.slane %v47_v2, 3  ;;  %v53_v53 = vld [vmem:[#allocation2 + $0x30] sm:$0xff]  ;;  %v54_v56 = vld [vmem:[#allocation2 + $0x38] sm:$0xff] }
  0x12   :  { %v66_v10 = vrot.slane %v48_v3, 4  ;;  %v67_v11 = vrot.slane %v48_v3, 5  ;;  %v68_v12 = vrot.slane %v48_v3, 6  ;;  %v69_v13 = vrot.slane %v48_v3, 7 }
  0x13   :  { %v70_v14 = vrot.slane %v49_v4, 1  ;;  %v71_v15 = vrot.slane %v49_v4, 2  ;;  %v72_v16 = vrot.slane %v49_v4, 3  ;;  %v73_v17 = vrot.slane %v50_v6, 4 }
  0x14   :  { %v74_v18 = vrot.slane %v50_v6, 5  ;;  %v75_v19 = vrot.slane %v50_v6, 6  ;;  %v76_v20 = vrot.slane %v50_v6, 7  ;;  %v92_v21 = vsel %vm91_vm0, %v47_v2, %v63_v7 }
  0x15   :  { %v94_v22 = vsel %vm93_vm1, %v64_v8, %v65_v9  ;;  %v98_v24 = vsel %vm97_vm3, %v66_v10, %v67_v11  ;;  %v100_v25 = vsel %vm99_vm4, %v68_v12, %v69_v13  ;;  %v106_v26 = vsel %vm105_vm7, %v47_v2, %v63_v7 }
  0x16   :  { %v96_v23 = vsel %vm95_vm2, %v92_v21, %v94_v22  ;;  %v102_v27 = vsel %vm101_vm5, %v98_v24, %v100_v25  ;;  %v108_v28 = vsel %vm107_vm8, %v64_v8, %v65_v9  ;;  %v112_v29 = vsel %vm111_vm10, %v66_v10, %v67_v11 }
  0x17   :  { %v114_v30 = vsel %vm113_vm11, %v69_v13, %v68_v12  ;;  %v104_v31 = vsel %vm103_vm6, %v96_v23, %v102_v27  ;;  %v110_v32 = vsel %vm109_vm9, %v106_v26, %v108_v28  ;;  %v120_v34 = vsel %vm91_vm0, %v49_v4, %v70_v14 }
  0x18   :  { %v116_v33 = vsel %vm115_vm12, %v112_v29, %v114_v30  ;;  %v121_v36 = vsel %vm93_vm1, %v71_v15, %v72_v16  ;;  %v123_v37 = vsel %vm97_vm3, %v73_v17, %v74_v18  ;;  %v124_v38 = vsel %vm99_vm4, %v75_v19, %v76_v20 }
  0x19   :  { %v118_v35 = vsel %vm117_vm13, %v110_v32, %v116_v33  ;;  %v122_v40 = vsel %vm95_vm2, %v120_v34, %v121_v36  ;;  %v125_v41 = vsel %vm101_vm5, %v123_v37, %v124_v38  ;;  %v127_v42 = vsel %vm105_vm7, %v49_v4, %v70_v14 }
  0x1a   :  { %v119_v39 = vrot.slane %v118_v35, 1  ;;  %v126_v44 = vsel %vm103_vm6, %v122_v40, %v125_v41  ;;  %v128_v45 = vsel %vm107_vm8, %v71_v15, %v72_v16  ;;  %v130_v46 = vsel %vm111_vm10, %v73_v17, %v74_v18 }
  0x1b   :  { %v131_v47 = vsel %vm113_vm11, %v76_v20, %v75_v19  ;;  %v129_v49 = vsel %vm109_vm9, %v127_v42, %v128_v45  ;;  %v1148_v51 = vperm.slane %v104_v31, %v1118_v5  ;;  %v1155_v55 = vperm.slane %v126_v44, %v1118_v5 }
  0x1c   :  { %v132_v50 = vsel %vm115_vm12, %v130_v46, %v131_v47  ;;  %v1151_v52 = vperm.slane %v119_v39, %v1118_v5  ;;  %v77_v57 = vrot.slane %v51_v43, 1  ;;  %v78_v58 = vrot.slane %v51_v43, 2 }
  0x1d   :  { %v133_v54 = vsel %vm117_vm13, %v129_v49, %v132_v50  ;;  %213 = vst [vmem:[#allocation1] ss:$4 sm:$0xff] %v1148_v51  ;;  %v79_v60 = vrot.slane %v51_v43, 3  ;;  %v80_v61 = vrot.slane %v52_v48, 4  ;;  %v81_v62 = vrot.slane %v52_v48, 5 }
  0x1e   :  { %v134_v59 = vrot.slane %v133_v54, 1  ;;  %215 = vst [vmem:[#allocation1 + $0x1] ss:$4 sm:$0xff] %v1151_v52  ;;  %v82_v63 = vrot.slane %v52_v48, 6  ;;  %v83_v0 = vrot.slane %v52_v48, 7  ;;  %v84_v1 = vrot.slane %v53_v53, 1 }
  0x1f   :  { %v85_v2 = vrot.slane %v53_v53, 2  ;;  %217 = vst [vmem:[#allocation1 + $0x2] ss:$4 sm:$0xff] %v1155_v55  ;;  %v86_v4 = vrot.slane %v53_v53, 3  ;;  %v87_v6 = vrot.slane %v54_v56, 4  ;;  %v88_v7 = vrot.slane %v54_v56, 5 }
  0x20   :  { %v1160_v3 = vperm.slane %v134_v59, %v1118_v5  ;;  %v89_v8 = vrot.slane %v54_v56, 6  ;;  %v90_v9 = vrot.slane %v54_v56, 7  ;;  %v135_v10 = vsel %vm91_vm0, %v51_v43, %v77_v57 }
  0x21   :  { %v136_v11 = vsel %vm93_vm1, %v78_v58, %v79_v60  ;;  %v138_v13 = vsel %vm97_vm3, %v80_v61, %v81_v62  ;;  %v139_v14 = vsel %vm99_vm4, %v82_v63, %v83_v0  ;;  %v142_v15 = vsel %vm105_vm7, %v51_v43, %v77_v57 }
  0x22   :  { %219 = vst [vmem:[#allocation1 + $0x3] ss:$4 sm:$0xff] %v1160_v3  ;;  %v137_v12 = vsel %vm95_vm2, %v135_v10, %v136_v11  ;;  %v140_v16 = vsel %vm101_vm5, %v138_v13, %v139_v14  ;;  %v143_v17 = vsel %vm107_vm8, %v78_v58, %v79_v60  ;;  %v145_v18 = vsel %vm111_vm10, %v80_v61, %v81_v62 }
  0x23   :  { %v146_v19 = vsel %vm113_vm11, %v83_v0, %v82_v63  ;;  %v141_v20 = vsel %vm103_vm6, %v137_v12, %v140_v16  ;;  %v144_v21 = vsel %vm109_vm9, %v142_v15, %v143_v17  ;;  %v150_v23 = vsel %vm91_vm0, %v53_v53, %v84_v1 }
  0x24   :  { %v147_v22 = vsel %vm115_vm12, %v145_v18, %v146_v19  ;;  %v151_v25 = vsel %vm93_vm1, %v85_v2, %v86_v4  ;;  %v153_v26 = vsel %vm97_vm3, %v87_v6, %v88_v7  ;;  %v154_v27 = vsel %vm99_vm4, %v89_v8, %v90_v9 }
  0x25   :  { %v148_v24 = vsel %vm117_vm13, %v144_v21, %v147_v22  ;;  %v152_v29 = vsel %vm95_vm2, %v150_v23, %v151_v25  ;;  %v155_v30 = vsel %vm101_vm5, %v153_v26, %v154_v27  ;;  %v157_v31 = vsel %vm105_vm7, %v53_v53, %v84_v1 }
  0x26   :  { %v149_v28 = vrot.slane %v148_v24, 1  ;;  %v156_v32 = vsel %vm103_vm6, %v152_v29, %v155_v30  ;;  %v158_v33 = vsel %vm107_vm8, %v85_v2, %v86_v4  ;;  %v160_v34 = vsel %vm111_vm10, %v87_v6, %v88_v7 }
  0x27   :  { %v161_v35 = vsel %vm113_vm11, %v90_v9, %v89_v8  ;;  %v159_v36 = vsel %vm109_vm9, %v157_v31, %v158_v33  ;;  %v1192_v38 = vperm.slane %v141_v20, %v1118_v5  ;;  %v1199_v43 = vperm.slane %v156_v32, %v1118_v5 }
  0x28   :  { %v162_v37 = vsel %vm115_vm12, %v160_v34, %v161_v35  ;;  %v1195_v39 = vperm.slane %v149_v28, %v1118_v5  ;;  %v1082_v61 = vmov 512.0   ;;  %v1083_v2 = vmov 269488144  }
  0x29   :  { %v228_v40 = vld.sshfl [vmem:[#allocation1] sm:$0xff pattern:$0x73625140]  ;;  %v229_v41 = vld.sshfl [vmem:[#allocation1 + $0x8] sm:$0xff pattern:$0x73625140]  ;;  %v163_v42 = vsel %vm117_vm13, %v159_v36, %v162_v37  ;;  %989 = vrcp.f32 %v1082_v61  ;;  %v266_v4 = vunpack.c.l.s4 %v1083_v2 }
  0x2a   :  { %v230_v44 = vld.sshfl [vmem:[#allocation1 + $0x10] sm:$0xff pattern:$0x73625140]  ;;  %v244_v45 = vadd.f32 %v229_v41, %v228_v40  ;;  %v231_v46 = vld.sshfl [vmem:[#allocation1 + $0x18] sm:$0xff pattern:$0x73625140] }
  0x2b   :  { %v164_v47 = vrot.slane %v163_v42, 1  ;;  %221 = vst [vmem:[#allocation1 + $0x20] ss:$4 sm:$0xff] %v1192_v38  ;;  %v1084_v6 = vmov 842150450   ;;  %v1207_v13 = vunpack.c.0.s8 %v266_v4  ;;  %v1087_v61 = vmov 0  }
  0x2c   :  { %v245_v48 = vadd.f32 %v244_v45, %v230_v44  ;;  %223 = vst [vmem:[#allocation1 + $0x21] ss:$4 sm:$0xff] %v1195_v39  ;;  %v270_v7 = vunpack.c.l.s4 %v1084_v6  ;;  %v1085_v8 = vmov 1414812756   ;;  %v1086_v10 = vmov 1987475062   ;;  %985 = vset.pattern.permute.xlu2 %v1087_v61  ;;  %987 = vset.pattern.permute.xlu1 %v1087_v61 }
  0x2d   :  { %v204_v49 = vperm.slane %v164_v47, %v1118_v5  ;;  %225 = vst [vmem:[#allocation1 + $0x22] ss:$4 sm:$0xff] %v1199_v43  ;;  %v274_v9 = vunpack.c.l.s4 %v1085_v8  ;;  %v278_v11 = vunpack.c.l.s4 %v1086_v10  ;;  %986 = vset.pattern.permute.xlu0 %v1087_v61  ;;  %v645_v61 = vld [vmem:[#allocation5 + $0xe8] sm:$0xff]  ;;  %vm573_vm11 = vcmask 1047559  }
  0x2e   :  { %v246_v50 = vadd.f32 %v245_v48, %v231_v46  ;;  %v1209_v14 = vunpack.c.0.s8 %v270_v7 }
  0x2f   :  { %227 = vst [vmem:[#allocation1 + $0x23] ss:$4 sm:$0xff] %v204_v49  ;;  %v990_v62 = vpop.eup %989  ;;  %v1211_v15 = vunpack.c.0.s8 %v274_v9  ;;  %v1213_v16 = vunpack.c.0.s8 %v278_v11 }
  0x30   :  { %247 = vadd.xlane.f32.xlu0 %v246_v50  ;;  %v255_v63 = vmul.f32 512.0, %v990_v62  ;;  %vm259_vm14 = vweird.f32 %v990_v62 }
  0x32   :  { %v256_v0 = vsub.f32 1.0, %v255_v63 }
  0x34   :  { %v257_v1 = vmul.f32 %v990_v62, %v256_v0 }
  0x36   :  { %v232_v53 = vld.sshfl [vmem:[#allocation1 + $0x20] sm:$0xff pattern:$0x73625140]  ;;  %v233_v54 = vld.sshfl [vmem:[#allocation1 + $0x28] sm:$0xff pattern:$0x73625140]  ;;  %v258_v5 = vadd.f32 %v990_v62, %v257_v1 }
  0x37   :  { %v234_v56 = vld.sshfl [vmem:[#allocation1 + $0x30] sm:$0xff pattern:$0x73625140]  ;;  %v249_v57 = vadd.f32 %v233_v54, %v232_v53  ;;  %v235_v58 = vld.sshfl [vmem:[#allocation1 + $0x38] sm:$0xff pattern:$0x73625140] }
  0x38   :  { %v1205_v12 = vsel %vm259_vm14, %v990_v62, %v258_v5 }
  0x39   :  { %v250_v59 = vadd.f32 %v249_v57, %v234_v56 }
  0x3b   :  { %v251_v60 = vadd.f32 %v250_v59, %v235_v58 }
  0x3d   :  { %252 = vadd.xlane.f32.xlu0 %v251_v60 }
  0xa3   :  { %v248_v17 = vpop.xlane.xlu0 %247 }
  0xa4   :  { %v261_v18 = vmul.f32 %v1205_v12, %v248_v17 }
  0xa6   :  { %v268_v19 = vperm.slane %v261_v18, %v1207_v13  ;;  %v272_v20 = vperm.slane %v261_v18, %v1209_v14  ;;  %v276_v21 = vperm.slane %v261_v18, %v1211_v15  ;;  %v280_v22 = vperm.slane %v261_v18, %v1213_v16 }
  0xa8   :  { %v1221_v23 = vsub.f32 %v1148_v51, %v268_v19  ;;  %v1224_v24 = vsub.f32 %v1151_v52, %v272_v20  ;;  %v1227_v25 = vsub.f32 %v1155_v55, %v276_v21  ;;  %v1230_v26 = vsub.f32 %v1160_v3, %v280_v22 }
  0xaa   :  { %v313_v27 = vmul.f32 %v1221_v23, %v1221_v23  ;;  %v314_v28 = vmul.f32 %v1224_v24, %v1224_v24  ;;  %v315_v29 = vmul.f32 %v1227_v25, %v1227_v25  ;;  %v316_v51 = vmul.f32 %v1230_v26, %v1230_v26 }
  0xac   :  { %329 = vst [vmem:[#allocation1] ss:$4 sm:$0xff] %v313_v27 }
  0xad   :  { %331 = vst [vmem:[#allocation1 + $0x1] ss:$4 sm:$0xff] %v314_v28 }
  0xae   :  { %333 = vst [vmem:[#allocation1 + $0x2] ss:$4 sm:$0xff] %v315_v29 }
  0xaf   :  { %335 = vst [vmem:[#allocation1 + $0x3] ss:$4 sm:$0xff] %v316_v51 }
  0xb0   :  { %v253_v52 = vpop.xlane.xlu0 %252 }
  0xb1   :  { %v262_v55 = vmul.f32 %v1205_v12, %v253_v52 }
  0xb3   :  { %v284_v3 = vperm.slane %v262_v55, %v1207_v13  ;;  %v288_v30 = vperm.slane %v262_v55, %v1209_v14  ;;  %v292_v31 = vperm.slane %v262_v55, %v1211_v15  ;;  %v296_v32 = vperm.slane %v262_v55, %v1213_v16 }
  0xb5   :  { %v1246_v33 = vsub.f32 %v1192_v38, %v284_v3  ;;  %v1249_v34 = vsub.f32 %v1195_v39, %v288_v30  ;;  %v1252_v35 = vsub.f32 %v1199_v43, %v292_v31  ;;  %v1254_v36 = vsub.f32 %v204_v49, %v296_v32 }
  0xb6   :  { %v344_v37 = vld.sshfl [vmem:[#allocation1] sm:$0xff pattern:$0x73625140]  ;;  %v345_v40 = vld.sshfl [vmem:[#allocation1 + $0x8] sm:$0xff pattern:$0x73625140] }
  0xb7   :  { %v317_v41 = vmul.f32 %v1246_v33, %v1246_v33  ;;  %v318_v42 = vmul.f32 %v1249_v34, %v1249_v34  ;;  %v319_v38 = vmul.f32 %v1252_v35, %v1252_v35  ;;  %v320_v39 = vmul.f32 %v1254_v36, %v1254_v36  ;;  %v346_v43 = vld.sshfl [vmem:[#allocation1 + $0x10] sm:$0xff pattern:$0x73625140]  ;;  %v347_v46 = vld.sshfl [vmem:[#allocation1 + $0x18] sm:$0xff pattern:$0x73625140] }
  0xb8   :  { %v360_v44 = vadd.f32 %v345_v40, %v344_v37 }
  0xb9   :  { %337 = vst [vmem:[#allocation1 + $0x20] ss:$4 sm:$0xff] %v317_v41 }
  0xba   :  { %339 = vst [vmem:[#allocation1 + $0x21] ss:$4 sm:$0xff] %v318_v42  ;;  %v361_v45 = vadd.f32 %v360_v44, %v346_v43 }
  0xbb   :  { %341 = vst [vmem:[#allocation1 + $0x22] ss:$4 sm:$0xff] %v319_v38 }
  0xbc   :  { %343 = vst [vmem:[#allocation1 + $0x23] ss:$4 sm:$0xff] %v320_v39  ;;  %v362_v47 = vadd.f32 %v361_v45, %v347_v46 }
  0xbe   :  { %363 = vadd.xlane.f32.xlu1 %v362_v47 }
  0xc3   :  { %v348_v48 = vld.sshfl [vmem:[#allocation1 + $0x20] sm:$0xff pattern:$0x73625140]  ;;  %v349_v49 = vld.sshfl [vmem:[#allocation1 + $0x28] sm:$0xff pattern:$0x73625140] }
  0xc4   :  { %v350_v50 = vld.sshfl [vmem:[#allocation1 + $0x30] sm:$0xff pattern:$0x73625140]  ;;  %v365_v53 = vadd.f32 %v349_v49, %v348_v48  ;;  %v351_v54 = vld.sshfl [vmem:[#allocation1 + $0x38] sm:$0xff pattern:$0x73625140] }
  0xc5   :  { %v631_v48 = vld [vmem:[#allocation5 + $0x78] sm:$0xff] }
  0xc6   :  { %v366_v56 = vadd.f32 %v365_v53, %v350_v50  ;;  %v647_v49 = vld [vmem:[#allocation5 + $0xf8] sm:$0xff]  ;;  %787 = vmatpush.msra.mxu0 %v631_v48 }
  0xc7   :  { %v663_v50 = vld [vmem:[#allocation5 + $0x178] sm:$0xff]  ;;  %807 = vmatpush.msra.mxu1 %v647_v49 }
  0xc8   :  { %v367_v57 = vadd.f32 %v366_v56, %v351_v54  ;;  %v679_v53 = vld [vmem:[#allocation5 + $0x1f8] sm:$0xff]  ;;  %v630_v54 = vld [vmem:[#allocation5 + $0x70] sm:$0xff]  ;;  %827 = vmatpush.msra.mxu2 %v663_v50  ;;  %v653_v50 = vld [vmem:[#allocation5 + $0x128] sm:$0xff] }
  0xc9   :  { %v646_v56 = vld [vmem:[#allocation5 + $0xf0] sm:$0xff]  ;;  %847 = vmatpush.msra.mxu3 %v679_v53  ;;  %788 = vmatpush.msra.mxu0 %v630_v54  ;;  %v669_v53 = vld [vmem:[#allocation5 + $0x1a8] sm:$0xff] }
  0xca   :  { %368 = vadd.xlane.f32.xlu1 %v367_v57  ;;  %v662_v57 = vld [vmem:[#allocation5 + $0x170] sm:$0xff]  ;;  %808 = vmatpush.msra.mxu1 %v646_v56 }
  0xcb   :  { %828 = vmatpush.msra.mxu2 %v662_v57 }
  0xcc   :  { %809 = vmatpush.msra.mxu1 %v645_v61 }
 0x131   :  { %v364_v58 = vpop.xlane.xlu1 %363 }
 0x132   :  { %v370_v59 = vmul.f32 %v364_v58, %v1205_v12  ;;  %v678_v58 = vld [vmem:[#allocation5 + $0x1f0] sm:$0xff] }
 0x133   :  { %848 = vmatpush.msra.mxu3 %v678_v58 }
 0x134   :  { %v372_v60 = vadd.f32 1e-05, %v370_v59  ;;  %v476_v10 = vmul.f32 512.0, %v370_v59  ;;  %v629_v59 = vld [vmem:[#allocation5 + $0x68] sm:$0xff] }
 0x135   :  { %789 = vmatpush.msra.mxu0 %v629_v59 }
 0x136   :  { %991 = vrsqrt.f32 %v372_v60  ;;  %vm380_vm0 = vweird.f32 %v372_v60 }
 0x13c   :  { %v992_v62 = vpop.eup %991 }
 0x13d   :  { %v375_v63 = vmul.f32 %v992_v62, %v372_v60  ;;  %v369_v0 = vpop.xlane.xlu1 %368  ;;  %vm381_vm15 = vweird.f32 %v992_v62 }
 0x13e   :  { %v371_v1 = vmul.f32 %v369_v0, %v1205_v12  ;;  %vm382_vm2 = vmor %vm380_vm0, %vm381_vm15  ;;  %v628_v0 = vld [vmem:[#allocation5 + $0x60] sm:$0xff] }
 0x13f   :  { %v376_v5 = vmul.f32 %v992_v62, %v375_v63  ;;  %v677_v63 = vld [vmem:[#allocation5 + $0x1e8] sm:$0xff]  ;;  %790 = vmatpush.msra.mxu0 %v628_v0 }
 0x140   :  { %v373_v2 = vadd.f32 1e-05, %v371_v1  ;;  %v477_v30 = vmul.f32 512.0, %v371_v1  ;;  %v644_v1 = vld [vmem:[#allocation5 + $0xe0] sm:$0xff]  ;;  %849 = vmatpush.msra.mxu3 %v677_v63 }
 0x141   :  { %v377_v4 = vmul.f32 0.5, %v376_v5  ;;  %v660_v5 = vld [vmem:[#allocation5 + $0x160] sm:$0xff]  ;;  %810 = vmatpush.msra.mxu1 %v644_v1 }
 0x142   :  { %993 = vrsqrt.f32 %v373_v2  ;;  %vm390_vm6 = vweird.f32 %v373_v2 }
 0x143   :  { %v378_v6 = vsub.f32 1.5, %v377_v4  ;;  %v627_v4 = vld [vmem:[#allocation5 + $0x58] sm:$0xff] }
 0x144   :  { %791 = vmatpush.msra.mxu0 %v627_v4 }
 0x145   :  { %v379_v7 = vmul.f32 %v992_v62, %v378_v6  ;;  %v643_v6 = vld [vmem:[#allocation5 + $0xd8] sm:$0xff] }
 0x146   :  { %811 = vmatpush.msra.mxu1 %v643_v6  ;;  %v620_v6 = vld [vmem:[#allocation5 + $0x20] sm:$0xff] }
 0x147   :  { %v1266_v8 = vsel %vm382_vm2, %v992_v62, %v379_v7  ;;  %v661_v62 = vld [vmem:[#allocation5 + $0x168] sm:$0xff]  ;;  %v659_v7 = vld [vmem:[#allocation5 + $0x158] sm:$0xff] }
 0x148   :  { %v994_v9 = vpop.eup %993  ;;  %v478_v11 = vmul.f32 %v1266_v8, %v1266_v8  ;;  %829 = vmatpush.msra.mxu2 %v661_v62 }
 0x149   :  { %v385_v17 = vmul.f32 %v994_v9, %v373_v2  ;;  %vm391_vm5 = vweird.f32 %v994_v9  ;;  %v676_v2 = vld [vmem:[#allocation5 + $0x1e0] sm:$0xff] }
 0x14a   :  { %v480_v18 = vmul.f32 %v478_v11, %v476_v10  ;;  %vm392_vm9 = vmor %vm390_vm6, %vm391_vm5  ;;  %830 = vmatpush.msra.mxu2 %v660_v5  ;;  %850 = vmatpush.msra.mxu3 %v676_v2  ;;  %v626_v10 = vld [vmem:[#allocation5 + $0x50] sm:$0xff] }
 0x14b   :  { %v386_v19 = vmul.f32 %v994_v9, %v385_v17  ;;  %v642_v11 = vld [vmem:[#allocation5 + $0xd0] sm:$0xff]  ;;  %792 = vmatpush.msra.mxu0 %v626_v10  ;;  %v668_v10 = vld [vmem:[#allocation5 + $0x1a0] sm:$0xff] }
 0x14c   :  { %v487_v12 = vperm.slane %v480_v18, %v1207_v13  ;;  %v491_v20 = vperm.slane %v480_v18, %v1209_v14  ;;  %v495_v29 = vperm.slane %v480_v18, %v1211_v15  ;;  %v499_v55 = vperm.slane %v480_v18, %v1213_v16  ;;  %v658_v17 = vld [vmem:[#allocation5 + $0x150] sm:$0xff]  ;;  %831 = vmatpush.msra.mxu2 %v659_v7  ;;  %v636_v7 = vld [vmem:[#allocation5 + $0xa0] sm:$0xff] }
 0x14d   :  { %v387_v21 = vmul.f32 0.5, %v386_v19  ;;  %v674_v18 = vld [vmem:[#allocation5 + $0x1d0] sm:$0xff]  ;;  %v625_v19 = vld [vmem:[#allocation5 + $0x48] sm:$0xff]  ;;  %812 = vmatpush.msra.mxu1 %v642_v11  ;;  %v619_v11 = vld [vmem:[#allocation5 + $0x18] sm:$0xff] }
 0x14e   :  { %516 = vst [vmem:[#allocation1] ss:$4 sm:$0xff] %v487_v12  ;;  %v641_v12 = vld [vmem:[#allocation5 + $0xc8] sm:$0xff]  ;;  %832 = vmatpush.msra.mxu2 %v658_v17  ;;  %793 = vmatpush.msra.mxu0 %v625_v19  ;;  %v635_v17 = vld [vmem:[#allocation5 + $0x98] sm:$0xff] }
 0x14f   :  { %519 = vst [vmem:[#allocation1 + $0x20] ss:$4 sm:$0xff] %v491_v20  ;;  %v388_v22 = vsub.f32 1.5, %v387_v21  ;;  %v557_v20 = vlaneseq  ;;  %813 = vmatpush.msra.mxu1 %v641_v12  ;;  %v667_v19 = vld [vmem:[#allocation5 + $0x198] sm:$0xff]  ;;  %v618_v12 = vld [vmem:[#allocation5 + $0x10] sm:$0xff] }
 0x151   :  { %v389_v27 = vmul.f32 %v994_v9, %v388_v22  ;;  %v657_v22 = vld [vmem:[#allocation5 + $0x148] sm:$0xff] }
 0x152   :  { %833 = vmatpush.msra.mxu2 %v657_v22  ;;  %v666_v22 = vld [vmem:[#allocation5 + $0x190] sm:$0xff] }
 0x153   :  { %v1272_v28 = vsel %vm392_vm9, %v994_v9, %v389_v27  ;;  %v675_v9 = vld [vmem:[#allocation5 + $0x1d8] sm:$0xff]  ;;  %v673_v27 = vld [vmem:[#allocation5 + $0x1c8] sm:$0xff] }
 0x154   :  { %v479_v51 = vmul.f32 %v1272_v28, %v1272_v28  ;;  %851 = vmatpush.msra.mxu3 %v675_v9  ;;  %v652_v9 = vld [vmem:[#allocation5 + $0x120] sm:$0xff] }
 0x155   :  { %v517_v52 = vld.sshfl [vmem:[#allocation1] sm:$0xff pattern:$0x73625140] }
 0x156   :  { %534 = vperm.xlu2 %985, %v517_v52   ;;  %v520_v3 = vld.sshfl [vmem:[#allocation1 + $0x20] sm:$0xff pattern:$0x73625140]  ;;  %521 = vst [vmem:[#allocation1] ss:$4 sm:$0xff] %v495_v29  ;;  %v481_v31 = vmul.f32 %v479_v51, %v477_v30  ;;  %852 = vmatpush.msra.mxu3 %v674_v18  ;;  %v624_v29 = vld [vmem:[#allocation5 + $0x40] sm:$0xff] }
 0x157   :  { %523 = vst [vmem:[#allocation1 + $0x20] ss:$4 sm:$0xff] %v499_v55  ;;  %v640_v51 = vld [vmem:[#allocation5 + $0xc0] sm:$0xff]  ;;  %v639_v30 = vld [vmem:[#allocation5 + $0xb8] sm:$0xff]  ;;  %794 = vmatpush.msra.mxu0 %v624_v29  ;;  %v633_v29 = vld [vmem:[#allocation5 + $0x88] sm:$0xff] }
 0x158   :  { %v503_v32 = vperm.slane %v481_v31, %v1207_v13  ;;  %v507_v37 = vperm.slane %v481_v31, %v1209_v14  ;;  %v511_v42 = vperm.slane %v481_v31, %v1211_v15  ;;  %v515_v38 = vperm.slane %v481_v31, %v1213_v16  ;;  %v656_v52 = vld [vmem:[#allocation5 + $0x140] sm:$0xff]  ;;  %853 = vmatpush.msra.mxu3 %v673_v27  ;;  %v651_v18 = vld [vmem:[#allocation5 + $0x118] sm:$0xff]  ;;  %v617_v27 = vld [vmem:[#allocation5 + $0x8] sm:$0xff] }
 0x159   :  { %v672_v55 = vld [vmem:[#allocation5 + $0x1c0] sm:$0xff]  ;;  %v558_v31 = vand.u32 127, %v557_v20  ;;  %814 = vmatpush.msra.mxu1 %v640_v51  ;;  %834 = vmatpush.msra.mxu2 %v656_v52  ;;  %v634_v20 = vld [vmem:[#allocation5 + $0x90] sm:$0xff]  ;;  %v649_v51 = vld [vmem:[#allocation5 + $0x108] sm:$0xff] }
 0x15a   :  { %854 = vmatpush.msra.mxu3 %v672_v55  ;;  %v665_v52 = vld [vmem:[#allocation5 + $0x188] sm:$0xff]  ;;  %v616_v55 = vld [vmem:[#allocation5] sm:$0xff] }
 0x15b   :  { %815 = vmatpush.msra.mxu1 %v639_v30  ;;  %v648_v30 = vld [vmem:[#allocation5 + $0x100] sm:$0xff] }
 0x15d   :  { %v522_v40 = vld.sshfl [vmem:[#allocation1] sm:$0xff pattern:$0x73625140] }
 0x15e   :  { %537 = vperm.xlu2 %985, %v520_v3   ;;  %540 = vperm.xlu0 %986, %v522_v40   ;;  %525 = vst [vmem:[#allocation1] ss:$4 sm:$0xff] %v503_v32  ;;  %v524_v41 = vld.sshfl [vmem:[#allocation1 + $0x20] sm:$0xff pattern:$0x73625140]  ;;  %v622_v40 = vld [vmem:[#allocation5 + $0x30] sm:$0xff] }
 0x15f   :  { %543 = vperm.xlu1 %987, %v524_v41   ;;  %527 = vst [vmem:[#allocation1 + $0x20] ss:$4 sm:$0xff] %v507_v37  ;;  %v623_v3 = vld [vmem:[#allocation5 + $0x38] sm:$0xff]  ;;  %v638_v41 = vld [vmem:[#allocation5 + $0xb0] sm:$0xff] }
 0x160   :  { %v655_v32 = vld [vmem:[#allocation5 + $0x138] sm:$0xff]  ;;  %795 = vmatpush.msra.mxu0 %v623_v3  ;;  %816 = vmatpush.msra.mxu1 %v638_v41  ;;  %v632_v3 = vld [vmem:[#allocation5 + $0x80] sm:$0xff] }
 0x161   :  { %v671_v37 = vld [vmem:[#allocation5 + $0x1b8] sm:$0xff]  ;;  %835 = vmatpush.msra.mxu2 %v655_v32 }
 0x162   :  { %855 = vmatpush.msra.mxu3 %v671_v37  ;;  %796 = vmatpush.msra.mxu0 %v622_v40  ;;  %v695_v32 = vld [vmem:[#allocation5 + $0x278] sm:$0xff] }
 0x163   :  { %v711_v37 = vld [vmem:[#allocation5 + $0x2f8] sm:$0xff] }
 0x164   :  { %v727_v40 = vld [vmem:[#allocation5 + $0x378] sm:$0xff] }
 0x165   :  { %v526_v39 = vld.sshfl [vmem:[#allocation1] sm:$0xff pattern:$0x73625140] }
 0x166   :  { %546 = vperm.xlu2 %985, %v526_v39   ;;  %529 = vst [vmem:[#allocation1] ss:$4 sm:$0xff] %v511_v42  ;;  %v528_v44 = vld.sshfl [vmem:[#allocation1 + $0x20] sm:$0xff pattern:$0x73625140]  ;;  %v670_v39 = vld [vmem:[#allocation5 + $0x1b0] sm:$0xff] }
 0x167   :  { %531 = vst [vmem:[#allocation1 + $0x20] ss:$4 sm:$0xff] %v515_v38  ;;  %v654_v38 = vld [vmem:[#allocation5 + $0x130] sm:$0xff]  ;;  %856 = vmatpush.msra.mxu3 %v670_v39  ;;  %v743_v41 = vld [vmem:[#allocation5 + $0x3f8] sm:$0xff] }
 0x168   :  { %836 = vmatpush.msra.mxu2 %v654_v38  ;;  %v710_v38 = vld [vmem:[#allocation5 + $0x2f0] sm:$0xff] }
 0x169   :  { %857 = vmatpush.msra.mxu3 %v669_v53  ;;  %v726_v39 = vld [vmem:[#allocation5 + $0x370] sm:$0xff]  ;;  %v708_v53 = vld [vmem:[#allocation5 + $0x2e0] sm:$0xff] }
 0x16a   :  { %837 = vmatpush.msra.mxu2 %v653_v50  ;;  %v692_v50 = vld [vmem:[#allocation5 + $0x260] sm:$0xff] }
 0x16b   :  { %858 = vmatpush.msra.mxu3 %v668_v10  ;;  %v687_v10 = vld [vmem:[#allocation5 + $0x238] sm:$0xff] }
 0x16c   :  { %838 = vmatpush.msra.mxu2 %v652_v9 }
 0x16d   :  { %v530_v43 = vld.sshfl [vmem:[#allocation1] sm:$0xff pattern:$0x73625140]  ;;  %859 = vmatpush.msra.mxu3 %v667_v19  ;;  %v686_v19 = vld [vmem:[#allocation5 + $0x230] sm:$0xff] }
 0x16e   :  { %549 = vperm.xlu2 %985, %v528_v44   ;;  %v532_v45 = vld.sshfl [vmem:[#allocation1 + $0x20] sm:$0xff pattern:$0x73625140]  ;;  %v621_v44 = vld [vmem:[#allocation5 + $0x28] sm:$0xff]  ;;  %839 = vmatpush.msra.mxu2 %v651_v18 }
 0x16f   :  { %797 = vmatpush.msra.mxu0 %v621_v44  ;;  %860 = vmatpush.msra.mxu3 %v666_v22  ;;  %v742_v44 = vld [vmem:[#allocation5 + $0x3f0] sm:$0xff]  ;;  %v735_v18 = vld [vmem:[#allocation5 + $0x3b8] sm:$0xff]  ;;  %v685_v22 = vld [vmem:[#allocation5 + $0x228] sm:$0xff] }
 0x171   :  { %798 = vmatpush.msra.mxu0 %v620_v6  ;;  %861 = vmatpush.msra.mxu3 %v665_v52  ;;  %v720_v6 = vld [vmem:[#allocation5 + $0x340] sm:$0xff] }
 0x172   :  { %v684_v52 = vld [vmem:[#allocation5 + $0x220] sm:$0xff] }
 0x173   :  { %799 = vmatpush.msra.mxu0 %v619_v11  ;;  %v703_v11 = vld [vmem:[#allocation5 + $0x2b8] sm:$0xff] }
 0x175   :  { %800 = vmatpush.msra.mxu0 %v618_v12  ;;  %v702_v12 = vld [vmem:[#allocation5 + $0x2b0] sm:$0xff] }
 0x176   :  { %552 = vperm.xlu2 %985, %v530_v43   ;;  %v637_v43 = vld [vmem:[#allocation5 + $0xa8] sm:$0xff] }
 0x177   :  { %817 = vmatpush.msra.mxu1 %v637_v43  ;;  %801 = vmatpush.msra.mxu0 %v617_v27  ;;  %v693_v43 = vld [vmem:[#allocation5 + $0x268] sm:$0xff] }
 0x178   :  { %v701_v27 = vld [vmem:[#allocation5 + $0x2a8] sm:$0xff] }
 0x179   :  { %818 = vmatpush.msra.mxu1 %v636_v7  ;;  %802 = vmatpush.msra.mxu0 %v616_v55  ;;  %v736_v7 = vld [vmem:[#allocation5 + $0x3c0] sm:$0xff] }
 0x17a   :  { %v700_v55 = vld [vmem:[#allocation5 + $0x2a0] sm:$0xff] }
 0x17b   :  { %819 = vmatpush.msra.mxu1 %v635_v17  ;;  %867 = vmatpush.msrb.mxu0 %v695_v32  ;;  %v719_v17 = vld [vmem:[#allocation5 + $0x338] sm:$0xff] }
 0x17d   :  { %820 = vmatpush.msra.mxu1 %v634_v20  ;;  %v718_v20 = vld [vmem:[#allocation5 + $0x330] sm:$0xff] }
 0x17e   :  { %555 = vperm.xlu2 %985, %v532_v45  }
 0x17f   :  { %821 = vmatpush.msra.mxu1 %v633_v29  ;;  %v717_v29 = vld [vmem:[#allocation5 + $0x328] sm:$0xff] }
 0x181   :  { %822 = vmatpush.msra.mxu1 %v632_v3  ;;  %v716_v3 = vld [vmem:[#allocation5 + $0x320] sm:$0xff] }
 0x183   :  { %887 = vmatpush.msrb.mxu1 %v711_v37  ;;  %v683_v37 = vld [vmem:[#allocation5 + $0x218] sm:$0xff] }
 0x185   :  { %888 = vmatpush.msrb.mxu1 %v710_v38  ;;  %v715_v38 = vld [vmem:[#allocation5 + $0x318] sm:$0xff] }
 0x1b0   :  { %v1282_v46 = vpop.permute.xlu2 %534 }
 0x1b1   :  { %v559_v45 = vperm.slane %v1282_v46, %v558_v31 }
 0x1b8   :  { %v1284_v47 = vpop.permute.xlu2 %537 }
 0x1b9   :  { %v560_v42 = vperm.slane %v1284_v47, %v558_v31 }
 0x1bb   :  { %v567_v47 = vsel %vm105_vm7, %v560_v42, %v559_v45  ;;  %vm576_vm7 = vcmask 15360   ;;  %v694_v42 = vld [vmem:[#allocation5 + $0x270] sm:$0xff]  ;;  %v709_v45 = vld [vmem:[#allocation5 + $0x2e8] sm:$0xff] }
 0x1bc   :  { %868 = vmatpush.msrb.mxu0 %v694_v42  ;;  %889 = vmatpush.msrb.mxu1 %v709_v45 }
 0x1be   :  { %869 = vmatpush.msrb.mxu0 %v693_v43  ;;  %890 = vmatpush.msrb.mxu1 %v708_v53  ;;  %v1088_v43 = vmov 1966171168   ;;  %v698_v53 = vld [vmem:[#allocation5 + $0x290] sm:$0xff] }
 0x1bf   :  { %v445_v45 = vunpack.c.l.s4 %v1088_v43 }
 0x1c0   :  { %v1286_v60 = vpop.permute.xlu2 %546  ;;  %870 = vmatpush.msrb.mxu0 %v692_v50  ;;  %v411_v50 = vperm.slane %v1266_v8, %v1213_v16 }
 0x1c1   :  { %v563_v58 = vperm.slane %v1286_v60, %v558_v31 }
 0x1c8   :  { %v550_v21 = vpop.permute.xlu2 %549 }
 0x1c9   :  { %v564_v61 = vperm.slane %v550_v21, %v558_v31  ;;  %v650_v21 = vld [vmem:[#allocation5 + $0x110] sm:$0xff] }
 0x1ca   :  { %840 = vmatpush.msra.mxu2 %v650_v21  ;;  %v734_v21 = vld [vmem:[#allocation5 + $0x3b0] sm:$0xff] }
 0x1cc   :  { %841 = vmatpush.msra.mxu2 %v649_v51  ;;  %v733_v51 = vld [vmem:[#allocation5 + $0x3a8] sm:$0xff] }
 0x1ce   :  { %842 = vmatpush.msra.mxu2 %v648_v30  ;;  %v732_v30 = vld [vmem:[#allocation5 + $0x3a0] sm:$0xff] }
 0x1d0   :  { %v553_v48 = vpop.permute.xlu2 %552  ;;  %v541_v49 = vpop.permute.xlu0 %540  ;;  %907 = vmatpush.msrb.mxu2 %v727_v40  ;;  %v699_v40 = vld [vmem:[#allocation5 + $0x298] sm:$0xff] }
 0x1d1   :  { %v544_v54 = vpop.permute.xlu1 %543  ;;  %v561_v56 = vperm.slane %v541_v49, %v558_v31  ;;  %v565_v0 = vperm.slane %v553_v48, %v558_v31  ;;  %v725_v48 = vld [vmem:[#allocation5 + $0x368] sm:$0xff] }
 0x1d2   :  { %v562_v57 = vperm.slane %v544_v54, %v558_v31  ;;  %908 = vmatpush.msrb.mxu2 %v726_v39  ;;  %v741_v49 = vld [vmem:[#allocation5 + $0x3e8] sm:$0xff]  ;;  %v724_v54 = vld [vmem:[#allocation5 + $0x360] sm:$0xff]  ;;  %v731_v39 = vld [vmem:[#allocation5 + $0x398] sm:$0xff] }
 0x1d3   :  { %v568_v59 = vsel %vm93_vm1, %v561_v56, %v567_v47  ;;  %v740_v56 = vld [vmem:[#allocation5 + $0x3e0] sm:$0xff]  ;;  %v691_v47 = vld [vmem:[#allocation5 + $0x258] sm:$0xff] }
 0x1d4   :  { %v569_v46 = vsel %vm107_vm8, %v562_v57, %v568_v59  ;;  %909 = vmatpush.msrb.mxu2 %v725_v48  ;;  %v707_v57 = vld [vmem:[#allocation5 + $0x2d8] sm:$0xff]  ;;  %871 = vmatpush.msrb.mxu0 %v691_v47  ;;  %v403_v48 = vperm.slane %v1266_v8, %v1209_v14 }
 0x1d5   :  { %v570_v62 = vsel %vm97_vm3, %v563_v58, %v569_v46  ;;  %v723_v58 = vld [vmem:[#allocation5 + $0x358] sm:$0xff]  ;;  %891 = vmatpush.msrb.mxu1 %v707_v57  ;;  %v690_v46 = vld [vmem:[#allocation5 + $0x250] sm:$0xff]  ;;  %v681_v57 = vld [vmem:[#allocation5 + $0x208] sm:$0xff] }
 0x1d6   :  { %v571_v63 = vsel %vm111_vm10, %v564_v61, %v570_v62  ;;  %910 = vmatpush.msrb.mxu2 %v724_v54  ;;  %v739_v59 = vld [vmem:[#allocation5 + $0x3d8] sm:$0xff]  ;;  %v706_v61 = vld [vmem:[#allocation5 + $0x2d0] sm:$0xff]  ;;  %872 = vmatpush.msrb.mxu0 %v690_v46  ;;  %v729_v46 = vld [vmem:[#allocation5 + $0x388] sm:$0xff] }
 0x1d7   :  { %v572_v2 = vsel %vm99_vm4, %v565_v0, %v571_v63  ;;  %v722_v62 = vld [vmem:[#allocation5 + $0x350] sm:$0xff]  ;;  %892 = vmatpush.msrb.mxu1 %v706_v61  ;;  %v689_v0 = vld [vmem:[#allocation5 + $0x248] sm:$0xff]  ;;  %v680_v61 = vld [vmem:[#allocation5 + $0x200] sm:$0xff] }
 0x1d8   :  { %v556_v1 = vpop.permute.xlu2 %555  ;;  %911 = vmatpush.msrb.mxu2 %v723_v58  ;;  %v738_v63 = vld [vmem:[#allocation5 + $0x3d0] sm:$0xff]  ;;  %873 = vmatpush.msrb.mxu0 %v689_v0  ;;  %v697_v58 = vld [vmem:[#allocation5 + $0x288] sm:$0xff] }
 0x1d9   :  { %v566_v5 = vperm.slane %v556_v1, %v558_v31  ;;  %v664_v31 = vld [vmem:[#allocation5 + $0x180] sm:$0xff]  ;;  %v705_v1 = vld [vmem:[#allocation5 + $0x2c8] sm:$0xff]  ;;  %v714_v54 = vld [vmem:[#allocation5 + $0x310] sm:$0xff] }
 0x1da   :  { %862 = vmatpush.msra.mxu3 %v664_v31  ;;  %912 = vmatpush.msrb.mxu2 %v722_v62  ;;  %v696_v62 = vld [vmem:[#allocation5 + $0x280] sm:$0xff] }
 0x1db   :  { %v574_v4 = vsel %vm573_vm11, %v566_v5, %v572_v2  ;;  %v721_v5 = vld [vmem:[#allocation5 + $0x348] sm:$0xff]  ;;  %893 = vmatpush.msrb.mxu1 %v705_v1  ;;  %v712_v1 = vld [vmem:[#allocation5 + $0x300] sm:$0xff] }
 0x1dc   :  { %v577_v60 = vsel %vm576_vm7, %v574_v4, 0.0  ;;  %927 = vmatpush.msrb.mxu3 %v743_v41  ;;  %v737_v2 = vld [vmem:[#allocation5 + $0x3c8] sm:$0xff]  ;;  %v688_v4 = vld [vmem:[#allocation5 + $0x240] sm:$0xff]  ;;  %913 = vmatpush.msrb.mxu2 %v721_v5  ;;  %v399_v41 = vperm.slane %v1266_v8, %v1207_v13 }
 0x1dd   :  { %578 = vadd.xlane.f32.xlu1 %v577_v60  ;;  %v704_v60 = vld [vmem:[#allocation5 + $0x2c0] sm:$0xff]  ;;  %874 = vmatpush.msrb.mxu0 %v688_v4  ;;  %v437_v4 = vmul.f32 %v403_v48, %v1224_v24  ;;  %v427_v24 = vperm.slane %v1272_v28, %v1213_v16  ;;  %v988_v48 = vld [vmem:[%s1343_s2] ss:$0 sm:$0xff] }
 0x1de   :  { %928 = vmatpush.msrb.mxu3 %v742_v44  ;;  %894 = vmatpush.msrb.mxu1 %v704_v60  ;;  %v682_v44 = vld [vmem:[#allocation5 + $0x210] sm:$0xff]  ;;  %v728_v5 = vld [vmem:[#allocation5 + $0x380] sm:$0xff] }
 0x1df   :  { %914 = vmatpush.msrb.mxu2 %v720_v6  ;;  %875 = vmatpush.msrb.mxu0 %v687_v10  ;;  %v439_v6 = vmul.f32 %v411_v50, %v1230_v26 }
 0x1e0   :  { %929 = vmatpush.msrb.mxu3 %v741_v49  ;;  %895 = vmatpush.msrb.mxu1 %v703_v11  ;;  %v407_v49 = vperm.slane %v1266_v8, %v1211_v15  ;;  %v415_v8 = vperm.slane %v1272_v28, %v1207_v13  ;;  %v423_v13 = vperm.slane %v1272_v28, %v1211_v15 }
 0x1e1   :  { %915 = vmatpush.msrb.mxu2 %v719_v17  ;;  %876 = vmatpush.msrb.mxu0 %v686_v19 }
 0x1e2   :  { %930 = vmatpush.msrb.mxu3 %v740_v56  ;;  %896 = vmatpush.msrb.mxu1 %v702_v12  ;;  %v730_v56 = vld [vmem:[#allocation5 + $0x390] sm:$0xff]  ;;  %v438_v60 = vmul.f32 %v407_v49, %v1227_v25  ;;  %v440_v25 = vmul.f32 %v415_v8, %v1246_v33 }
 0x1e3   :  { %916 = vmatpush.msrb.mxu2 %v718_v20  ;;  %877 = vmatpush.msrb.mxu0 %v685_v22  ;;  %v443_v22 = vmul.f32 %v427_v24, %v1254_v36 }
 0x1e4   :  { %931 = vmatpush.msrb.mxu3 %v739_v59  ;;  %897 = vmatpush.msrb.mxu1 %v701_v27  ;;  %v713_v59 = vld [vmem:[#allocation5 + $0x308] sm:$0xff] }
 0x1e5   :  { %917 = vmatpush.msrb.mxu2 %v717_v29  ;;  %878 = vmatpush.msrb.mxu0 %v684_v52 }
 0x1e6   :  { %932 = vmatpush.msrb.mxu3 %v738_v63  ;;  %898 = vmatpush.msrb.mxu1 %v700_v55  ;;  %v436_v63 = vmul.f32 %v399_v41, %v1221_v23  ;;  %v419_v23 = vperm.slane %v1272_v28, %v1209_v14 }
 0x1e7   :  { %918 = vmatpush.msrb.mxu2 %v716_v3  ;;  %879 = vmatpush.msrb.mxu0 %v683_v37 }
 0x1e8   :  { %933 = vmatpush.msrb.mxu3 %v737_v2  ;;  %899 = vmatpush.msrb.mxu1 %v699_v40  ;;  %v446_v2 = vunpack.c.0.s8 %v445_v45 }
 0x1e9   :  { %919 = vmatpush.msrb.mxu2 %v715_v38  ;;  %880 = vmatpush.msrb.mxu0 %v682_v44 }
 0x1ea   :  { %934 = vmatpush.msrb.mxu3 %v736_v7  ;;  %900 = vmatpush.msrb.mxu1 %v698_v53  ;;  %v447_v26 = vperm.slane %v436_v63, %v446_v2  ;;  %v451_v15 = vperm.slane %v437_v4, %v446_v2  ;;  %v455_v11 = vperm.slane %v438_v60, %v446_v2 }
 0x1eb   :  { %920 = vmatpush.msrb.mxu2 %v714_v54  ;;  %881 = vmatpush.msrb.mxu0 %v681_v57  ;;  %v459_v17 = vperm.slane %v439_v6, %v446_v2  ;;  %v463_v16 = vperm.slane %v440_v25, %v446_v2 }
 0x1ec   :  { %935 = vmatpush.msrb.mxu3 %v735_v18  ;;  %901 = vmatpush.msrb.mxu1 %v697_v58  ;;  %v442_v18 = vmul.f32 %v423_v13, %v1252_v35  ;;  %v475_v35 = vperm.slane %v443_v22, %v446_v2 }
 0x1ed   :  { %921 = vmatpush.msrb.mxu2 %v713_v59  ;;  %882 = vmatpush.msrb.mxu0 %v680_v61 }
 0x1ee   :  { %936 = vmatpush.msrb.mxu3 %v734_v21  ;;  %902 = vmatpush.msrb.mxu1 %v696_v62 }
 0x1ef   :  { %922 = vmatpush.msrb.mxu2 %v712_v1 }
 0x1f0   :  { %937 = vmatpush.msrb.mxu3 %v733_v51 }
 0x1f2   :  { %938 = vmatpush.msrb.mxu3 %v732_v30 }
 0x1f4   :  { %939 = vmatpush.msrb.mxu3 %v731_v39 }
 0x1f6   :  { %940 = vmatpush.msrb.mxu3 %v730_v56 }
 0x1f8   :  { %941 = vmatpush.msrb.mxu3 %v729_v46 }
 0x1fa   :  { %942 = vmatpush.msrb.mxu3 %v728_v5 }
 0x250   :  { %v1297_v9 = vpop.xlane.xlu1 %578 }
 0x251   :  { %995 = vrsqrt.f32 %v1297_v9  ;;  %vm586_vm3 = vweird.f32 %v1297_v9 }
 0x257   :  { %v1300_v31 = vpop.eup %995 }
 0x258   :  { %v581_v32 = vmul.f32 %v1300_v31, %v1297_v9  ;;  %vm587_vm1 = vweird.f32 %v1300_v31  ;;  %v441_v9 = vmul.f32 %v419_v23, %v1249_v34 }
 0x259   :  { %vm588_vm4 = vmor %vm586_vm3, %vm587_vm1 }
 0x25a   :  { %v582_v42 = vmul.f32 %v1300_v31, %v581_v32  ;;  %v467_v55 = vperm.slane %v441_v9, %v446_v2 }
 0x25c   :  { %v583_v47 = vmul.f32 0.5, %v582_v42 }
 0x25e   :  { %v584_v0 = vsub.f32 1.5, %v583_v47 }
 0x260   :  { %v585_v7 = vmul.f32 %v1300_v31, %v584_v0 }
 0x262   :  { %v589_v14 = vsel %vm588_vm4, %v1300_v31, %v585_v7  ;;  %v471_v31 = vperm.slane %v442_v18, %v446_v2 }
 0x263   :  { %v590_v10 = vmin.f32 %v589_v14, 1.0 }
 0x265   :  { %v592_v19 = vperm.slane %v590_v10, 0  ;;  %v593_v12 = vperm.slane %v590_v10, 1  ;;  %v594_v20 = vperm.slane %v590_v10, 2  ;;  %v595_v21 = vperm.slane %v590_v10, 3 }
 0x266   :  { %v596_v28 = vperm.slane %v590_v10, 4  ;;  %v597_v33 = vperm.slane %v590_v10, 5  ;;  %v598_v27 = vperm.slane %v590_v10, 6  ;;  %v599_v3 = vperm.slane %v590_v10, 7 }
 0x267   :  { %v608_v29 = vmul.f32 %v592_v19, %v447_v26  ;;  %v609_v51 = vmul.f32 %v593_v12, %v451_v15  ;;  %v610_v52 = vmul.f32 %v594_v20, %v455_v11  ;;  %v611_v30 = vmul.f32 %v595_v21, %v459_v17 }
 0x268   :  { %v612_v34 = vmul.f32 %v596_v28, %v463_v16  ;;  %v613_v32 = vmul.f32 %v597_v33, %v467_v55  ;;  %v614_v37 = vmul.f32 %v598_v27, %v471_v31  ;;  %v615_v40 = vmul.f32 %v599_v3, %v475_v35 }
 0x269   :  { %756 = vst [vmem:[#allocation1] ss:$9 sm:$0xff] %v608_v29 }
 0x26a   :  { %758 = vst [vmem:[#allocation1 + $0x1] ss:$9 sm:$0xff] %v609_v51 }
 0x26b   :  { %760 = vst [vmem:[#allocation1 + $0x2] ss:$9 sm:$0xff] %v610_v52 }
 0x26c   :  { %762 = vst [vmem:[#allocation1 + $0x3] ss:$9 sm:$0xff] %v611_v30 }
 0x26d   :  { %764 = vst [vmem:[#allocation1 + $0x4] ss:$9 sm:$0xff] %v612_v34 }
 0x26e   :  { %766 = vst [vmem:[#allocation1 + $0x5] ss:$9 sm:$0xff] %v613_v32 }
 0x26f   :  { %768 = vst [vmem:[#allocation1 + $0x6] ss:$9 sm:$0xff] %v614_v37 }
 0x270   :  { %770 = vst [vmem:[#allocation1 + $0x7] ss:$9 sm:$0xff] %v615_v40 }
 0x277   :  { %v771_v36 = vld [vmem:[#allocation1] sm:$0xff]  ;;  %v772_v41 = vld [vmem:[#allocation1 + $0x9] sm:$0xff]  ;;  %v773_v42 = vld [vmem:[#allocation1 + $0x12] sm:$0xff] }
 0x278   :  { %803 = vmatmul.f32.vlgmr.msra.gmra.mxu0 %v771_v36  ;;  %823 = vmatmul.f32.vlgmr.msra.gmra.mxu1 %v772_v41  ;;  %v774_v38 = vld [vmem:[#allocation1 + $0x1b] sm:$0xff]  ;;  %v775_v39 = vld [vmem:[#allocation1 + $0x24] sm:$0xff]  ;;  %v776_v44 = vld [vmem:[#allocation1 + $0x2d] sm:$0xff] }
 0x279   :  { %843 = vmatmul.f32.vlgmr.msra.gmra.mxu2 %v773_v42  ;;  %863 = vmatmul.f32.vlgmr.msra.gmra.mxu3 %v774_v38  ;;  %v777_v43 = vld [vmem:[#allocation1 + $0x36] sm:$0xff]  ;;  %v778_v45 = vld [vmem:[#allocation1 + $0x3f] sm:$0xff] }
 0x280   :  { %883 = vmatmul.f32.vlgmr.msrb.gmra.mxu0 %v775_v39  ;;  %903 = vmatmul.f32.vlgmr.msrb.gmra.mxu1 %v776_v44 }
 0x281   :  { %923 = vmatmul.f32.vlgmr.msrb.gmra.mxu2 %v777_v43  ;;  %943 = vmatmul.f32.vlgmr.msrb.gmra.mxu3 %v778_v45 }
 0x2f5   :  { %v804_v49 = vpop.f32.mrf.mxu0  ;;  %v824_v53 = vpop.f32.mrf.mxu1 }
 0x2f6   :  { %v805_v50 = vadd.f32 %v988_v48, %v804_v49 }
 0x2f8   :  { %v825_v54 = vadd.f32 %v824_v53, %v805_v50 }
 0x2fc   :  { %v844_v56 = vpop.f32.mrf.mxu2  ;;  %v864_v47 = vpop.f32.mrf.mxu3 }
 0x2fd   :  { %v845_v57 = vadd.f32 %v844_v56, %v825_v54  ;;  %v884_v59 = vpop.f32.mrf.mxu0  ;;  %v904_v61 = vpop.f32.mrf.mxu1 }
 0x2ff   :  { %v865_v58 = vadd.f32 %v864_v47, %v845_v57 }
 0x301   :  { %v885_v46 = vadd.f32 %v884_v59, %v865_v58 }
 0x303   :  { %v905_v62 = vadd.f32 %v904_v61, %v885_v46 }
 0x304   :  { %v924_v63 = vpop.f32.mrf.mxu2  ;;  %v944_v0 = vpop.f32.mrf.mxu3 }
 0x305   :  { %v925_v8 = vadd.f32 %v924_v63, %v905_v62 }
 0x307   :  { %v945_v1 = vadd.f32 %v944_v0, %v925_v8 }
 0x309   :  { %947 = vst [vmem:[#allocation7] sm:$0xff] %v945_v1 }
 0x30a   :  { %951 = vsyncadd [#allocation4], 96  ;;  %s954_s27 = sshll.u32 %s1344_s3, 4  ;;  %s1089_s28 = smov [#allocation7]   ;;  %s955_s27 = int_to_ptr.hbm [resolvable:$true] %s954_s27 }
 0x30b   :  { %s952_s29 = sshll.u32 %s1089_s28, 4  ;;  %s1090_s30 = smov 32   ;;  %s953_s29 = int_to_ptr.vmem [resolvable:$true] %s952_s29 }
 0x30c   :  { %s1091_s4 = smov 2  }
 0x30d   :  { %960 = dma.vmem_to_hbm [thread:$0]  %s953_s29, 32, %s955_s27, [#allocation4], %s1090_s30, %s1090_s30, %s1091_s4  }
 0x30e   :  { %1073 = dma.done.wait [#allocation4], 128  }
 0x30f   :  { %1074 = vsyncadd [#allocation4], 4294967168 }
 0x310   :  { %965 = vsyncpa [#allocation3], 1 }
 0x311   :  { %966 = vsyncpa [#allocation6], 1 }
 0x312   :  { %967 = vsyncpa [#allocation4], 1 }

// kernel: tpu_custom_call.1
= control target key start
LH: loop header
LB: loop body
LE: loop exit
PB: predicated region body
PF: predicated region fallthrough
CT: control target
= control target key end

     0   :  { %8 = vsyncpa [#allocation3], 0  ;;  %s1341_s0 = inlined_call_operand.hbm [shape: f32[2,1024], index: 0, kind: input, shape index: {}]   ;;  %s1342_s1 = inlined_call_operand.hbm [shape: f32[1024,128], index: 1, kind: input, shape index: {}]   ;;  %s1343_s2 = inlined_call_operand.vmem [shape: f32[1,128], index: 2, kind: input, shape index: {}]   ;;  %s1344_s3 = inlined_call_operand.hbm [shape: f32[2,128], index: 3, kind: output, shape index: {}]  }
   0x1   :  { %9 = vsyncpa [#allocation6], 0 }
   0x2   :  { %10 = vsyncpa [#allocation4], 0 }
   0x3   :  { %14 = vsyncadd [#allocation3], 768  ;;  %s15_s14 = sshll.u32 %s1341_s0, 4  ;;  %s1075_s15 = smov [#allocation2]   ;;  %s16_s14 = int_to_ptr.hbm [resolvable:$true] %s15_s14 }
   0x4   :  { %s17_s16 = sshll.u32 %s1075_s15, 4  ;;  %s28_s19 = sshll.u32 %s1342_s1, 4  ;;  %s18_s16 = int_to_ptr.vmem [resolvable:$true] %s17_s16  ;;  %s29_s19 = int_to_ptr.hbm [resolvable:$true] %s28_s19 }
   0x5   :  { %s1076_s20 = smov 256   ;;  %s1077_s21 = smov 16  }
   0x6   :  { %23 = dma.hbm_to_vmem [thread:$0]  %s16_s14, 256, %s18_s16, [#allocation3], %s1076_s20, %s1076_s20, %s1077_s21  }
   0x7   :  { %s1078_s22 = smov [#allocation5]   ;;  %s1079_s24 = smov 128  }
   0x8   :  { %s30_s23 = sshll.u32 %s1078_s22, 4  ;;  %s1080_s25 = smov 8   ;;  %s31_s23 = int_to_ptr.vmem [resolvable:$true] %s30_s23 }
   0x9   :  { %36 = dma.hbm_to_vmem [thread:$0]  %s29_s19, 16384, %s31_s23, [#allocation6], %s1079_s24, %s1079_s24, %s1080_s25  }
   0xa   :  { %1069 = dma.done.wait [#allocation3], 1024  }
   0xb   :  { %1070 = vsyncadd [#allocation3], 4294966272 }
   0xc   :  { %1071 = dma.done.wait [#allocation6], 16384  }
   0xd   :  { %1072 = vsyncadd [#allocation6], 4294950912  ;;  %vm91_vm0 = vcmask 1040384   ;;  %vm93_vm1 = vcmask 1042434   ;;  %vm95_vm2 = vcmask 1041408   ;;  %vm97_vm3 = vcmask 1044484  }
   0xe   :  { %v1081_v0 = vmov 1935823168   ;;  %vm99_vm4 = vcmask 1046534   ;;  %vm101_vm5 = vcmask 1045508   ;;  %vm103_vm6 = vcmask 1043456   ;;  %v47_v2 = vld [vmem:[#allocation2] sm:$0xff] }
   0xf   :  { %v174_v1 = vunpack.c.l.s4 %v1081_v0  ;;  %vm105_vm7 = vcmask 1041409   ;;  %vm107_vm8 = vcmask 1043459   ;;  %vm109_vm9 = vcmask 1042433   ;;  %v48_v3 = vld [vmem:[#allocation2 + $0x8] sm:$0xff]  ;;  %v49_v4 = vld [vmem:[#allocation2 + $0x10] sm:$0xff]  ;;  %v50_v6 = vld [vmem:[#allocation2 + $0x18] sm:$0xff] }
  0x10   :  { %vm111_vm10 = vcmask 1045509   ;;  %vm113_vm11 = vcmask 1046528   ;;  %vm115_vm12 = vcmask 1046533   ;;  %vm117_vm13 = vcmask 1044481   ;;  %v51_v43 = vld [vmem:[#allocation2 + $0x20] sm:$0xff]  ;;  %v52_v48 = vld [vmem:[#allocation2 + $0x28] sm:$0xff] }
  0x11   :  { %v1118_v5 = vunpack.c.0.s8 %v174_v1  ;;  %v63_v7 = vrot.slane %v47_v2, 1  ;;  %v64_v8 = vrot.slane %v47_v2, 2  ;;  %v65_v9 = vrot.slane %v47_v2, 3  ;;  %v53_v53 = vld [vmem:[#allocation2 + $0x30] sm:$0xff]  ;;  %v54_v56 = vld [vmem:[#allocation2 + $0x38] sm:$0xff] }
  0x12   :  { %v66_v10 = vrot.slane %v48_v3, 4  ;;  %v67_v11 = vrot.slane %v48_v3, 5  ;;  %v68_v12 = vrot.slane %v48_v3, 6  ;;  %v69_v13 = vrot.slane %v48_v3, 7 }
  0x13   :  { %v70_v14 = vrot.slane %v49_v4, 1  ;;  %v71_v15 = vrot.slane %v49_v4, 2  ;;  %v72_v16 = vrot.slane %v49_v4, 3  ;;  %v73_v17 = vrot.slane %v50_v6, 4 }
  0x14   :  { %v74_v18 = vrot.slane %v50_v6, 5  ;;  %v75_v19 = vrot.slane %v50_v6, 6  ;;  %v76_v20 = vrot.slane %v50_v6, 7  ;;  %v92_v21 = vsel %vm91_vm0, %v47_v2, %v63_v7 }
  0x15   :  { %v94_v22 = vsel %vm93_vm1, %v64_v8, %v65_v9  ;;  %v98_v24 = vsel %vm97_vm3, %v66_v10, %v67_v11  ;;  %v100_v25 = vsel %vm99_vm4, %v68_v12, %v69_v13  ;;  %v106_v26 = vsel %vm105_vm7, %v47_v2, %v63_v7 }
  0x16   :  { %v96_v23 = vsel %vm95_vm2, %v92_v21, %v94_v22  ;;  %v102_v27 = vsel %vm101_vm5, %v98_v24, %v100_v25  ;;  %v108_v28 = vsel %vm107_vm8, %v64_v8, %v65_v9  ;;  %v112_v29 = vsel %vm111_vm10, %v66_v10, %v67_v11 }
  0x17   :  { %v114_v30 = vsel %vm113_vm11, %v69_v13, %v68_v12  ;;  %v104_v31 = vsel %vm103_vm6, %v96_v23, %v102_v27  ;;  %v110_v32 = vsel %vm109_vm9, %v106_v26, %v108_v28  ;;  %v120_v34 = vsel %vm91_vm0, %v49_v4, %v70_v14 }
  0x18   :  { %v116_v33 = vsel %vm115_vm12, %v112_v29, %v114_v30  ;;  %v121_v36 = vsel %vm93_vm1, %v71_v15, %v72_v16  ;;  %v123_v37 = vsel %vm97_vm3, %v73_v17, %v74_v18  ;;  %v124_v38 = vsel %vm99_vm4, %v75_v19, %v76_v20 }
  0x19   :  { %v118_v35 = vsel %vm117_vm13, %v110_v32, %v116_v33  ;;  %v122_v40 = vsel %vm95_vm2, %v120_v34, %v121_v36  ;;  %v125_v41 = vsel %vm101_vm5, %v123_v37, %v124_v38  ;;  %v127_v42 = vsel %vm105_vm7, %v49_v4, %v70_v14 }
  0x1a   :  { %v119_v39 = vrot.slane %v118_v35, 1  ;;  %v126_v44 = vsel %vm103_vm6, %v122_v40, %v125_v41  ;;  %v128_v45 = vsel %vm107_vm8, %v71_v15, %v72_v16  ;;  %v130_v46 = vsel %vm111_vm10, %v73_v17, %v74_v18 }
  0x1b   :  { %v131_v47 = vsel %vm113_vm11, %v76_v20, %v75_v19  ;;  %v129_v49 = vsel %vm109_vm9, %v127_v42, %v128_v45  ;;  %v1148_v51 = vperm.slane %v104_v31, %v1118_v5  ;;  %v1155_v55 = vperm.slane %v126_v44, %v1118_v5 }
  0x1c   :  { %v132_v50 = vsel %vm115_vm12, %v130_v46, %v131_v47  ;;  %v1151_v52 = vperm.slane %v119_v39, %v1118_v5  ;;  %v77_v57 = vrot.slane %v51_v43, 1  ;;  %v78_v58 = vrot.slane %v51_v43, 2 }
  0x1d   :  { %v133_v54 = vsel %vm117_vm13, %v129_v49, %v132_v50  ;;  %213 = vst [vmem:[#allocation1] ss:$4 sm:$0xff] %v1148_v51  ;;  %v79_v60 = vrot.slane %v51_v43, 3  ;;  %v80_v61 = vrot.slane %v52_v48, 4  ;;  %v81_v62 = vrot.slane %v52_v48, 5 }
  0x1e   :  { %v134_v59 = vrot.slane %v133_v54, 1  ;;  %215 = vst [vmem:[#allocation1 + $0x1] ss:$4 sm:$0xff] %v1151_v52  ;;  %v82_v63 = vrot.slane %v52_v48, 6  ;;  %v83_v0 = vrot.slane %v52_v48, 7  ;;  %v84_v1 = vrot.slane %v53_v53, 1 }
  0x1f   :  { %v85_v2 = vrot.slane %v53_v53, 2  ;;  %217 = vst [vmem:[#allocation1 + $0x2] ss:$4 sm:$0xff] %v1155_v55  ;;  %v86_v4 = vrot.slane %v53_v53, 3  ;;  %v87_v6 = vrot.slane %v54_v56, 4  ;;  %v88_v7 = vrot.slane %v54_v56, 5 }
  0x20   :  { %v1160_v3 = vperm.slane %v134_v59, %v1118_v5  ;;  %v89_v8 = vrot.slane %v54_v56, 6  ;;  %v90_v9 = vrot.slane %v54_v56, 7  ;;  %v135_v10 = vsel %vm91_vm0, %v51_v43, %v77_v57 }
  0x21   :  { %v136_v11 = vsel %vm93_vm1, %v78_v58, %v79_v60  ;;  %v138_v13 = vsel %vm97_vm3, %v80_v61, %v81_v62  ;;  %v139_v14 = vsel %vm99_vm4, %v82_v63, %v83_v0  ;;  %v142_v15 = vsel %vm105_vm7, %v51_v43, %v77_v57 }
  0x22   :  { %219 = vst [vmem:[#allocation1 + $0x3] ss:$4 sm:$0xff] %v1160_v3  ;;  %v137_v12 = vsel %vm95_vm2, %v135_v10, %v136_v11  ;;  %v140_v16 = vsel %vm101_vm5, %v138_v13, %v139_v14  ;;  %v143_v17 = vsel %vm107_vm8, %v78_v58, %v79_v60  ;;  %v145_v18 = vsel %vm111_vm10, %v80_v61, %v81_v62 }
  0x23   :  { %v146_v19 = vsel %vm113_vm11, %v83_v0, %v82_v63  ;;  %v141_v20 = vsel %vm103_vm6, %v137_v12, %v140_v16  ;;  %v144_v21 = vsel %vm109_vm9, %v142_v15, %v143_v17  ;;  %v150_v23 = vsel %vm91_vm0, %v53_v53, %v84_v1 }
  0x24   :  { %v147_v22 = vsel %vm115_vm12, %v145_v18, %v146_v19  ;;  %v151_v25 = vsel %vm93_vm1, %v85_v2, %v86_v4  ;;  %v153_v26 = vsel %vm97_vm3, %v87_v6, %v88_v7  ;;  %v154_v27 = vsel %vm99_vm4, %v89_v8, %v90_v9 }
  0x25   :  { %v148_v24 = vsel %vm117_vm13, %v144_v21, %v147_v22  ;;  %v152_v29 = vsel %vm95_vm2, %v150_v23, %v151_v25  ;;  %v155_v30 = vsel %vm101_vm5, %v153_v26, %v154_v27  ;;  %v157_v31 = vsel %vm105_vm7, %v53_v53, %v84_v1 }
  0x26   :  { %v149_v28 = vrot.slane %v148_v24, 1  ;;  %v156_v32 = vsel %vm103_vm6, %v152_v29, %v155_v30  ;;  %v158_v33 = vsel %vm107_vm8, %v85_v2, %v86_v4  ;;  %v160_v34 = vsel %vm111_vm10, %v87_v6, %v88_v7 }
  0x27   :  { %v161_v35 = vsel %vm113_vm11, %v90_v9, %v89_v8  ;;  %v159_v36 = vsel %vm109_vm9, %v157_v31, %v158_v33  ;;  %v1192_v38 = vperm.slane %v141_v20, %v1118_v5  ;;  %v1199_v43 = vperm.slane %v156_v32, %v1118_v5 }
  0x28   :  { %v162_v37 = vsel %vm115_vm12, %v160_v34, %v161_v35  ;;  %v1195_v39 = vperm.slane %v149_v28, %v1118_v5  ;;  %v1082_v61 = vmov 512.0   ;;  %v1083_v2 = vmov 269488144  }
  0x29   :  { %v228_v40 = vld.sshfl [vmem:[#allocation1] sm:$0xff pattern:$0x73625140]  ;;  %v229_v41 = vld.sshfl [vmem:[#allocation1 + $0x8] sm:$0xff pattern:$0x73625140]  ;;  %v163_v42 = vsel %vm117_vm13, %v159_v36, %v162_v37  ;;  %989 = vrcp.f32 %v1082_v61  ;;  %v266_v4 = vunpack.c.l.s4 %v1083_v2 }
  0x2a   :  { %v230_v44 = vld.sshfl [vmem:[#allocation1 + $0x10] sm:$0xff pattern:$0x73625140]  ;;  %v244_v45 = vadd.f32 %v229_v41, %v228_v40  ;;  %v231_v46 = vld.sshfl [vmem:[#allocation1 + $0x18] sm:$0xff pattern:$0x73625140] }
  0x2b   :  { %v164_v47 = vrot.slane %v163_v42, 1  ;;  %221 = vst [vmem:[#allocation1 + $0x20] ss:$4 sm:$0xff] %v1192_v38  ;;  %v1084_v6 = vmov 842150450   ;;  %v1207_v13 = vunpack.c.0.s8 %v266_v4  ;;  %v1087_v61 = vmov 0  }
  0x2c   :  { %v245_v48 = vadd.f32 %v244_v45, %v230_v44  ;;  %223 = vst [vmem:[#allocation1 + $0x21] ss:$4 sm:$0xff] %v1195_v39  ;;  %v270_v7 = vunpack.c.l.s4 %v1084_v6  ;;  %v1085_v8 = vmov 1414812756   ;;  %v1086_v10 = vmov 1987475062   ;;  %985 = vset.pattern.permute.xlu2 %v1087_v61  ;;  %987 = vset.pattern.permute.xlu1 %v1087_v61 }
  0x2d   :  { %v204_v49 = vperm.slane %v164_v47, %v1118_v5  ;;  %225 = vst [vmem:[#allocation1 + $0x22] ss:$4 sm:$0xff] %v1199_v43  ;;  %v274_v9 = vunpack.c.l.s4 %v1085_v8  ;;  %v278_v11 = vunpack.c.l.s4 %v1086_v10  ;;  %986 = vset.pattern.permute.xlu0 %v1087_v61  ;;  %v645_v61 = vld [vmem:[#allocation5 + $0xe8] sm:$0xff]  ;;  %vm573_vm11 = vcmask 1047559  }
  0x2e   :  { %v246_v50 = vadd.f32 %v245_v48, %v231_v46  ;;  %v1209_v14 = vunpack.c.0.s8 %v270_v7 }
  0x2f   :  { %227 = vst [vmem:[#allocation1 + $0x23] ss:$4 sm:$0xff] %v204_v49  ;;  %v990_v62 = vpop.eup %989  ;;  %v1211_v15 = vunpack.c.0.s8 %v274_v9  ;;  %v1213_v16 = vunpack.c.0.s8 %v278_v11 }
  0x30   :  { %247 = vadd.xlane.f32.xlu0 %v246_v50  ;;  %v255_v63 = vmul.f32 512.0, %v990_v62  ;;  %vm259_vm14 = vweird.f32 %v990_v62 }
  0x32   :  { %v256_v0 = vsub.f32 1.0, %v255_v63 }
  0x34   :  { %v257_v1 = vmul.f32 %v990_v62, %v256_v0 }
  0x36   :  { %v232_v53 = vld.sshfl [vmem:[#allocation1 + $0x20] sm:$0xff pattern:$0x73625140]  ;;  %v233_v54 = vld.sshfl [vmem:[#allocation1 + $0x28] sm:$0xff pattern:$0x73625140]  ;;  %v258_v5 = vadd.f32 %v990_v62, %v257_v1 }
  0x37   :  { %v234_v56 = vld.sshfl [vmem:[#allocation1 + $0x30] sm:$0xff pattern:$0x73625140]  ;;  %v249_v57 = vadd.f32 %v233_v54, %v232_v53  ;;  %v235_v58 = vld.sshfl [vmem:[#allocation1 + $0x38] sm:$0xff pattern:$0x73625140] }
  0x38   :  { %v1205_v12 = vsel %vm259_vm14, %v990_v62, %v258_v5 }
  0x39   :  { %v250_v59 = vadd.f32 %v249_v57, %v234_v56 }
  0x3b   :  { %v251_v60 = vadd.f32 %v250_v59, %v235_v58 }
  0x3d   :  { %252 = vadd.xlane.f32.xlu0 %v251_v60 }
  0xa3   :  { %v248_v17 = vpop.xlane.xlu0 %247 }
  0xa4   :  { %v261_v18 = vmul.f32 %v1205_v12, %v248_v17 }
  0xa6   :  { %v268_v19 = vperm.slane %v261_v18, %v1207_v13  ;;  %v272_v20 = vperm.slane %v261_v18, %v1209_v14  ;;  %v276_v21 = vperm.slane %v261_v18, %v1211_v15  ;;  %v280_v22 = vperm.slane %v261_v18, %v1213_v16 }
  0xa8   :  { %v1221_v23 = vsub.f32 %v1148_v51, %v268_v19  ;;  %v1224_v24 = vsub.f32 %v1151_v52, %v272_v20  ;;  %v1227_v25 = vsub.f32 %v1155_v55, %v276_v21  ;;  %v1230_v26 = vsub.f32 %v1160_v3, %v280_v22 }
  0xaa   :  { %v313_v27 = vmul.f32 %v1221_v23, %v1221_v23  ;;  %v314_v28 = vmul.f32 %v1224_v24, %v1224_v24  ;;  %v315_v29 = vmul.f32 %v1227_v25, %v1227_v25  ;;  %v316_v51 = vmul.f32 %v1230_v26, %v1230_v26 }
  0xac   :  { %329 = vst [vmem:[#allocation1] ss:$4 sm:$0xff] %v313_v27 }
  0xad   :  { %331 = vst [vmem:[#allocation1 + $0x1] ss:$4 sm:$0xff] %v314_v28 }
  0xae   :  { %333 = vst [vmem:[#allocation1 + $0x2] ss:$4 sm:$0xff] %v315_v29 }
  0xaf   :  { %335 = vst [vmem:[#allocation1 + $0x3] ss:$4 sm:$0xff] %v316_v51 }
  0xb0   :  { %v253_v52 = vpop.xlane.xlu0 %252 }
  0xb1   :  { %v262_v55 = vmul.f32 %v1205_v12, %v253_v52 }
  0xb3   :  { %v284_v3 = vperm.slane %v262_v55, %v1207_v13  ;;  %v288_v30 = vperm.slane %v262_v55, %v1209_v14  ;;  %v292_v31 = vperm.slane %v262_v55, %v1211_v15  ;;  %v296_v32 = vperm.slane %v262_v55, %v1213_v16 }
  0xb5   :  { %v1246_v33 = vsub.f32 %v1192_v38, %v284_v3  ;;  %v1249_v34 = vsub.f32 %v1195_v39, %v288_v30  ;;  %v1252_v35 = vsub.f32 %v1199_v43, %v292_v31  ;;  %v1254_v36 = vsub.f32 %v204_v49, %v296_v32 }
  0xb6   :  { %v344_v37 = vld.sshfl [vmem:[#allocation1] sm:$0xff pattern:$0x73625140]  ;;  %v345_v40 = vld.sshfl [vmem:[#allocation1 + $0x8] sm:$0xff pattern:$0x73625140] }
  0xb7   :  { %v317_v41 = vmul.f32 %v1246_v33, %v1246_v33  ;;  %v318_v42 = vmul.f32 %v1249_v34, %v1249_v34  ;;  %v319_v38 = vmul.f32 %v1252_v35, %v1252_v35  ;;  %v320_v39 = vmul.f32 %v1254_v36, %v1254_v36  ;;  %v346_v43 = vld.sshfl [vmem:[#allocation1 + $0x10] sm:$0xff pattern:$0x73625140]  ;;  %v347_v46 = vld.sshfl [vmem:[#allocation1 + $0x18] sm:$0xff pattern:$0x73625140] }
  0xb8   :  { %v360_v44 = vadd.f32 %v345_v40, %v344_v37 }
  0xb9   :  { %337 = vst [vmem:[#allocation1 + $0x20] ss:$4 sm:$0xff] %v317_v41 }
  0xba   :  { %339 = vst [vmem:[#allocation1 + $0x21] ss:$4 sm:$0xff] %v318_v42  ;;  %v361_v45 = vadd.f32 %v360_v44, %v346_v43 }
  0xbb   :  { %341 = vst [vmem:[#allocation1 + $0x22] ss:$4 sm:$0xff] %v319_v38 }
  0xbc   :  { %343 = vst [vmem:[#allocation1 + $0x23] ss:$4 sm:$0xff] %v320_v39  ;;  %v362_v47 = vadd.f32 %v361_v45, %v347_v46 }
  0xbe   :  { %363 = vadd.xlane.f32.xlu1 %v362_v47 }
  0xc3   :  { %v348_v48 = vld.sshfl [vmem:[#allocation1 + $0x20] sm:$0xff pattern:$0x73625140]  ;;  %v349_v49 = vld.sshfl [vmem:[#allocation1 + $0x28] sm:$0xff pattern:$0x73625140] }
  0xc4   :  { %v350_v50 = vld.sshfl [vmem:[#allocation1 + $0x30] sm:$0xff pattern:$0x73625140]  ;;  %v365_v53 = vadd.f32 %v349_v49, %v348_v48  ;;  %v351_v54 = vld.sshfl [vmem:[#allocation1 + $0x38] sm:$0xff pattern:$0x73625140] }
  0xc5   :  { %v631_v48 = vld [vmem:[#allocation5 + $0x78] sm:$0xff] }
  0xc6   :  { %v366_v56 = vadd.f32 %v365_v53, %v350_v50  ;;  %v647_v49 = vld [vmem:[#allocation5 + $0xf8] sm:$0xff]  ;;  %787 = vmatpush.msra.mxu0 %v631_v48 }
  0xc7   :  { %v663_v50 = vld [vmem:[#allocation5 + $0x178] sm:$0xff]  ;;  %807 = vmatpush.msra.mxu1 %v647_v49 }
  0xc8   :  { %v367_v57 = vadd.f32 %v366_v56, %v351_v54  ;;  %v679_v53 = vld [vmem:[#allocation5 + $0x1f8] sm:$0xff]  ;;  %v630_v54 = vld [vmem:[#allocation5 + $0x70] sm:$0xff]  ;;  %827 = vmatpush.msra.mxu2 %v663_v50  ;;  %v653_v50 = vld [vmem:[#allocation5 + $0x128] sm:$0xff] }
  0xc9   :  { %v646_v56 = vld [vmem:[#allocation5 + $0xf0] sm:$0xff]  ;;  %847 = vmatpush.msra.mxu3 %v679_v53  ;;  %788 = vmatpush.msra.mxu0 %v630_v54  ;;  %v669_v53 = vld [vmem:[#allocation5 + $0x1a8] sm:$0xff] }
  0xca   :  { %368 = vadd.xlane.f32.xlu1 %v367_v57  ;;  %v662_v57 = vld [vmem:[#allocation5 + $0x170] sm:$0xff]  ;;  %808 = vmatpush.msra.mxu1 %v646_v56 }
  0xcb   :  { %828 = vmatpush.msra.mxu2 %v662_v57 }
  0xcc   :  { %809 = vmatpush.msra.mxu1 %v645_v61 }
 0x131   :  { %v364_v58 = vpop.xlane.xlu1 %363 }
 0x132   :  { %v370_v59 = vmul.f32 %v364_v58, %v1205_v12  ;;  %v678_v58 = vld [vmem:[#allocation5 + $0x1f0] sm:$0xff] }
 0x133   :  { %848 = vmatpush.msra.mxu3 %v678_v58 }
 0x134   :  { %v372_v60 = vadd.f32 1e-05, %v370_v59  ;;  %v476_v10 = vmul.f32 512.0, %v370_v59  ;;  %v629_v59 = vld [vmem:[#allocation5 + $0x68] sm:$0xff] }
 0x135   :  { %789 = vmatpush.msra.mxu0 %v629_v59 }
 0x136   :  { %991 = vrsqrt.f32 %v372_v60  ;;  %vm380_vm0 = vweird.f32 %v372_v60 }
 0x13c   :  { %v992_v62 = vpop.eup %991 }
 0x13d   :  { %v375_v63 = vmul.f32 %v992_v62, %v372_v60  ;;  %v369_v0 = vpop.xlane.xlu1 %368  ;;  %vm381_vm15 = vweird.f32 %v992_v62 }
 0x13e   :  { %v371_v1 = vmul.f32 %v369_v0, %v1205_v12  ;;  %vm382_vm2 = vmor %vm380_vm0, %vm381_vm15  ;;  %v628_v0 = vld [vmem:[#allocation5 + $0x60] sm:$0xff] }
 0x13f   :  { %v376_v5 = vmul.f32 %v992_v62, %v375_v63  ;;  %v677_v63 = vld [vmem:[#allocation5 + $0x1e8] sm:$0xff]  ;;  %790 = vmatpush.msra.mxu0 %v628_v0 }
 0x140   :  { %v373_v2 = vadd.f32 1e-05, %v371_v1  ;;  %v477_v30 = vmul.f32 512.0, %v371_v1  ;;  %v644_v1 = vld [vmem:[#allocation5 + $0xe0] sm:$0xff]  ;;  %849 = vmatpush.msra.mxu3 %v677_v63 }
 0x141   :  { %v377_v4 = vmul.f32 0.5, %v376_v5  ;;  %v660_v5 = vld [vmem:[#allocation5 + $0x160] sm:$0xff]  ;;  %810 = vmatpush.msra.mxu1 %v644_v1 }
 0x142   :  { %993 = vrsqrt.f32 %v373_v2  ;;  %vm390_vm6 = vweird.f32 %v373_v2 }
 0x143   :  { %v378_v6 = vsub.f32 1.5, %v377_v4  ;;  %v627_v4 = vld [vmem:[#allocation5 + $0x58] sm:$0xff] }
 0x144   :  { %791 = vmatpush.msra.mxu0 %v627_v4 }
 0x145   :  { %v379_v7 = vmul.f32 %v992_v62, %v378_v6  ;;  %v643_v6 = vld [vmem:[#allocation5 + $0xd8] sm:$0xff] }
 0x146   :  { %811 = vmatpush.msra.mxu1 %v643_v6  ;;  %v620_v6 = vld [vmem:[#allocation5 + $0x20] sm:$0xff] }
 0x147   :  { %v1266_v8 = vsel %vm382_vm2, %v992_v62, %v379_v7  ;;  %v661_v62 = vld [vmem:[#allocation5 + $0x168] sm:$0xff]  ;;  %v659_v7 = vld [vmem:[#allocation5 + $0x158] sm:$0xff] }
 0x148   :  { %v994_v9 = vpop.eup %993  ;;  %v478_v11 = vmul.f32 %v1266_v8, %v1266_v8  ;;  %829 = vmatpush.msra.mxu2 %v661_v62 }
 0x149   :  { %v385_v17 = vmul.f32 %v994_v9, %v373_v2  ;;  %vm391_vm5 = vweird.f32 %v994_v9  ;;  %v676_v2 = vld [vmem:[#allocation5 + $0x1e0] sm:$0xff] }
 0x14a   :  { %v480_v18 = vmul.f32 %v478_v11, %v476_v10  ;;  %vm392_vm9 = vmor %vm390_vm6, %vm391_vm5  ;;  %830 = vmatpush.msra.mxu2 %v660_v5  ;;  %850 = vmatpush.msra.mxu3 %v676_v2  ;;  %v626_v10 = vld [vmem:[#allocation5 + $0x50] sm:$0xff] }
 0x14b   :  { %v386_v19 = vmul.f32 %v994_v9, %v385_v17  ;;  %v642_v11 = vld [vmem:[#allocation5 + $0xd0] sm:$0xff]  ;;  %792 = vmatpush.msra.mxu0 %v626_v10  ;;  %v668_v10 = vld [vmem:[#allocation5 + $0x1a0] sm:$0xff] }
 0x14c   :  { %v487_v12 = vperm.slane %v480_v18, %v1207_v13  ;;  %v491_v20 = vperm.slane %v480_v18, %v1209_v14  ;;  %v495_v29 = vperm.slane %v480_v18, %v1211_v15  ;;  %v499_v55 = vperm.slane %v480_v18, %v1213_v16  ;;  %v658_v17 = vld [vmem:[#allocation5 + $0x150] sm:$0xff]  ;;  %831 = vmatpush.msra.mxu2 %v659_v7  ;;  %v636_v7 = vld [vmem:[#allocation5 + $0xa0] sm:$0xff] }
 0x14d   :  { %v387_v21 = vmul.f32 0.5, %v386_v19  ;;  %v674_v18 = vld [vmem:[#allocation5 + $0x1d0] sm:$0xff]  ;;  %v625_v19 = vld [vmem:[#allocation5 + $0x48] sm:$0xff]  ;;  %812 = vmatpush.msra.mxu1 %v642_v11  ;;  %v619_v11 = vld [vmem:[#allocation5 + $0x18] sm:$0xff] }
 0x14e   :  { %516 = vst [vmem:[#allocation1] ss:$4 sm:$0xff] %v487_v12  ;;  %v641_v12 = vld [vmem:[#allocation5 + $0xc8] sm:$0xff]  ;;  %832 = vmatpush.msra.mxu2 %v658_v17  ;;  %793 = vmatpush.msra.mxu0 %v625_v19  ;;  %v635_v17 = vld [vmem:[#allocation5 + $0x98] sm:$0xff] }
 0x14f   :  { %519 = vst [vmem:[#allocation1 + $0x20] ss:$4 sm:$0xff] %v491_v20  ;;  %v388_v22 = vsub.f32 1.5, %v387_v21  ;;  %v557_v20 = vlaneseq  ;;  %813 = vmatpush.msra.mxu1 %v641_v12  ;;  %v667_v19 = vld [vmem:[#allocation5 + $0x198] sm:$0xff]  ;;  %v618_v12 = vld [vmem:[#allocation5 + $0x10] sm:$0xff] }
 0x151   :  { %v389_v27 = vmul.f32 %v994_v9, %v388_v22  ;;  %v657_v22 = vld [vmem:[#allocation5 + $0x148] sm:$0xff] }
 0x152   :  { %833 = vmatpush.msra.mxu2 %v657_v22  ;;  %v666_v22 = vld [vmem:[#allocation5 + $0x190] sm:$0xff] }
 0x153   :  { %v1272_v28 = vsel %vm392_vm9, %v994_v9, %v389_v27  ;;  %v675_v9 = vld [vmem:[#allocation5 + $0x1d8] sm:$0xff]  ;;  %v673_v27 = vld [vmem:[#allocation5 + $0x1c8] sm:$0xff] }
 0x154   :  { %v479_v51 = vmul.f32 %v1272_v28, %v1272_v28  ;;  %851 = vmatpush.msra.mxu3 %v675_v9  ;;  %v652_v9 = vld [vmem:[#allocation5 + $0x120] sm:$0xff] }
 0x155   :  { %v517_v52 = vld.sshfl [vmem:[#allocation1] sm:$0xff pattern:$0x73625140] }
 0x156   :  { %534 = vperm.xlu2 %985, %v517_v52   ;;  %v520_v3 = vld.sshfl [vmem:[#allocation1 + $0x20] sm:$0xff pattern:$0x73625140]  ;;  %521 = vst [vmem:[#allocation1] ss:$4 sm:$0xff] %v495_v29  ;;  %v481_v31 = vmul.f32 %v479_v51, %v477_v30  ;;  %852 = vmatpush.msra.mxu3 %v674_v18  ;;  %v624_v29 = vld [vmem:[#allocation5 + $0x40] sm:$0xff] }
 0x157   :  { %523 = vst [vmem:[#allocation1 + $0x20] ss:$4 sm:$0xff] %v499_v55  ;;  %v640_v51 = vld [vmem:[#allocation5 + $0xc0] sm:$0xff]  ;;  %v639_v30 = vld [vmem:[#allocation5 + $0xb8] sm:$0xff]  ;;  %794 = vmatpush.msra.mxu0 %v624_v29  ;;  %v633_v29 = vld [vmem:[#allocation5 + $0x88] sm:$0xff] }
 0x158   :  { %v503_v32 = vperm.slane %v481_v31, %v1207_v13  ;;  %v507_v37 = vperm.slane %v481_v31, %v1209_v14  ;;  %v511_v42 = vperm.slane %v481_v31, %v1211_v15  ;;  %v515_v38 = vperm.slane %v481_v31, %v1213_v16  ;;  %v656_v52 = vld [vmem:[#allocation5 + $0x140] sm:$0xff]  ;;  %853 = vmatpush.msra.mxu3 %v673_v27  ;;  %v651_v18 = vld [vmem:[#allocation5 + $0x118] sm:$0xff]  ;;  %v617_v27 = vld [vmem:[#allocation5 + $0x8] sm:$0xff] }
 0x159   :  { %v672_v55 = vld [vmem:[#allocation5 + $0x1c0] sm:$0xff]  ;;  %v558_v31 = vand.u32 127, %v557_v20  ;;  %814 = vmatpush.msra.mxu1 %v640_v51  ;;  %834 = vmatpush.msra.mxu2 %v656_v52  ;;  %v634_v20 = vld [vmem:[#allocation5 + $0x90] sm:$0xff]  ;;  %v649_v51 = vld [vmem:[#allocation5 + $0x108] sm:$0xff] }
 0x15a   :  { %854 = vmatpush.msra.mxu3 %v672_v55  ;;  %v665_v52 = vld [vmem:[#allocation5 + $0x188] sm:$0xff]  ;;  %v616_v55 = vld [vmem:[#allocation5] sm:$0xff] }
 0x15b   :  { %815 = vmatpush.msra.mxu1 %v639_v30  ;;  %v648_v30 = vld [vmem:[#allocation5 + $0x100] sm:$0xff] }
 0x15d   :  { %v522_v40 = vld.sshfl [vmem:[#allocation1] sm:$0xff pattern:$0x73625140] }
 0x15e   :  { %537 = vperm.xlu2 %985, %v520_v3   ;;  %540 = vperm.xlu0 %986, %v522_v40   ;;  %525 = vst [vmem:[#allocation1] ss:$4 sm:$0xff] %v503_v32  ;;  %v524_v41 = vld.sshfl [vmem:[#allocation1 + $0x20] sm:$0xff pattern:$0x73625140]  ;;  %v622_v40 = vld [vmem:[#allocation5 + $0x30] sm:$0xff] }
 0x15f   :  { %543 = vperm.xlu1 %987, %v524_v41   ;;  %527 = vst [vmem:[#allocation1 + $0x20] ss:$4 sm:$0xff] %v507_v37  ;;  %v623_v3 = vld [vmem:[#allocation5 + $0x38] sm:$0xff]  ;;  %v638_v41 = vld [vmem:[#allocation5 + $0xb0] sm:$0xff] }
 0x160   :  { %v655_v32 = vld [vmem:[#allocation5 + $0x138] sm:$0xff]  ;;  %795 = vmatpush.msra.mxu0 %v623_v3  ;;  %816 = vmatpush.msra.mxu1 %v638_v41  ;;  %v632_v3 = vld [vmem:[#allocation5 + $0x80] sm:$0xff] }
 0x161   :  { %v671_v37 = vld [vmem:[#allocation5 + $0x1b8] sm:$0xff]  ;;  %835 = vmatpush.msra.mxu2 %v655_v32 }
 0x162   :  { %855 = vmatpush.msra.mxu3 %v671_v37  ;;  %796 = vmatpush.msra.mxu0 %v622_v40  ;;  %v695_v32 = vld [vmem:[#allocation5 + $0x278] sm:$0xff] }
 0x163   :  { %v711_v37 = vld [vmem:[#allocation5 + $0x2f8] sm:$0xff] }
 0x164   :  { %v727_v40 = vld [vmem:[#allocation5 + $0x378] sm:$0xff] }
 0x165   :  { %v526_v39 = vld.sshfl [vmem:[#allocation1] sm:$0xff pattern:$0x73625140] }
 0x166   :  { %546 = vperm.xlu2 %985, %v526_v39   ;;  %529 = vst [vmem:[#allocation1] ss:$4 sm:$0xff] %v511_v42  ;;  %v528_v44 = vld.sshfl [vmem:[#allocation1 + $0x20] sm:$0xff pattern:$0x73625140]  ;;  %v670_v39 = vld [vmem:[#allocation5 + $0x1b0] sm:$0xff] }
 0x167   :  { %531 = vst [vmem:[#allocation1 + $0x20] ss:$4 sm:$0xff] %v515_v38  ;;  %v654_v38 = vld [vmem:[#allocation5 + $0x130] sm:$0xff]  ;;  %856 = vmatpush.msra.mxu3 %v670_v39  ;;  %v743_v41 = vld [vmem:[#allocation5 + $0x3f8] sm:$0xff] }
 0x168   :  { %836 = vmatpush.msra.mxu2 %v654_v38  ;;  %v710_v38 = vld [vmem:[#allocation5 + $0x2f0] sm:$0xff] }
 0x169   :  { %857 = vmatpush.msra.mxu3 %v669_v53  ;;  %v726_v39 = vld [vmem:[#allocation5 + $0x370] sm:$0xff]  ;;  %v708_v53 = vld [vmem:[#allocation5 + $0x2e0] sm:$0xff] }
 0x16a   :  { %837 = vmatpush.msra.mxu2 %v653_v50  ;;  %v692_v50 = vld [vmem:[#allocation5 + $0x260] sm:$0xff] }
 0x16b   :  { %858 = vmatpush.msra.mxu3 %v668_v10  ;;  %v687_v10 = vld [vmem:[#allocation5 + $0x238] sm:$0xff] }
 0x16c   :  { %838 = vmatpush.msra.mxu2 %v652_v9 }
 0x16d   :  { %v530_v43 = vld.sshfl [vmem:[#allocation1] sm:$0xff pattern:$0x73625140]  ;;  %859 = vmatpush.msra.mxu3 %v667_v19  ;;  %v686_v19 = vld [vmem:[#allocation5 + $0x230] sm:$0xff] }
 0x16e   :  { %549 = vperm.xlu2 %985, %v528_v44   ;;  %v532_v45 = vld.sshfl [vmem:[#allocation1 + $0x20] sm:$0xff pattern:$0x73625140]  ;;  %v621_v44 = vld [vmem:[#allocation5 + $0x28] sm:$0xff]  ;;  %839 = vmatpush.msra.mxu2 %v651_v18 }
 0x16f   :  { %797 = vmatpush.msra.mxu0 %v621_v44  ;;  %860 = vmatpush.msra.mxu3 %v666_v22  ;;  %v742_v44 = vld [vmem:[#allocation5 + $0x3f0] sm:$0xff]  ;;  %v735_v18 = vld [vmem:[#allocation5 + $0x3b8] sm:$0xff]  ;;  %v685_v22 = vld [vmem:[#allocation5 + $0x228] sm:$0xff] }
 0x171   :  { %798 = vmatpush.msra.mxu0 %v620_v6  ;;  %861 = vmatpush.msra.mxu3 %v665_v52  ;;  %v720_v6 = vld [vmem:[#allocation5 + $0x340] sm:$0xff] }
 0x172   :  { %v684_v52 = vld [vmem:[#allocation5 + $0x220] sm:$0xff] }
 0x173   :  { %799 = vmatpush.msra.mxu0 %v619_v11  ;;  %v703_v11 = vld [vmem:[#allocation5 + $0x2b8] sm:$0xff] }
 0x175   :  { %800 = vmatpush.msra.mxu0 %v618_v12  ;;  %v702_v12 = vld [vmem:[#allocation5 + $0x2b0] sm:$0xff] }
 0x176   :  { %552 = vperm.xlu2 %985, %v530_v43   ;;  %v637_v43 = vld [vmem:[#allocation5 + $0xa8] sm:$0xff] }
 0x177   :  { %817 = vmatpush.msra.mxu1 %v637_v43  ;;  %801 = vmatpush.msra.mxu0 %v617_v27  ;;  %v693_v43 = vld [vmem:[#allocation5 + $0x268] sm:$0xff] }
 0x178   :  { %v701_v27 = vld [vmem:[#allocation5 + $0x2a8] sm:$0xff] }
 0x179   :  { %818 = vmatpush.msra.mxu1 %v636_v7  ;;  %802 = vmatpush.msra.mxu0 %v616_v55  ;;  %v736_v7 = vld [vmem:[#allocation5 + $0x3c0] sm:$0xff] }
 0x17a   :  { %v700_v55 = vld [vmem:[#allocation5 + $0x2a0] sm:$0xff] }
 0x17b   :  { %819 = vmatpush.msra.mxu1 %v635_v17  ;;  %867 = vmatpush.msrb.mxu0 %v695_v32  ;;  %v719_v17 = vld [vmem:[#allocation5 + $0x338] sm:$0xff] }
 0x17d   :  { %820 = vmatpush.msra.mxu1 %v634_v20  ;;  %v718_v20 = vld [vmem:[#allocation5 + $0x330] sm:$0xff] }
 0x17e   :  { %555 = vperm.xlu2 %985, %v532_v45  }
 0x17f   :  { %821 = vmatpush.msra.mxu1 %v633_v29  ;;  %v717_v29 = vld [vmem:[#allocation5 + $0x328] sm:$0xff] }
 0x181   :  { %822 = vmatpush.msra.mxu1 %v632_v3  ;;  %v716_v3 = vld [vmem:[#allocation5 + $0x320] sm:$0xff] }
 0x183   :  { %887 = vmatpush.msrb.mxu1 %v711_v37  ;;  %v683_v37 = vld [vmem:[#allocation5 + $0x218] sm:$0xff] }
 0x185   :  { %888 = vmatpush.msrb.mxu1 %v710_v38  ;;  %v715_v38 = vld [vmem:[#allocation5 + $0x318] sm:$0xff] }
 0x1b0   :  { %v1282_v46 = vpop.permute.xlu2 %534 }
 0x1b1   :  { %v559_v45 = vperm.slane %v1282_v46, %v558_v31 }
 0x1b8   :  { %v1284_v47 = vpop.permute.xlu2 %537 }
 0x1b9   :  { %v560_v42 = vperm.slane %v1284_v47, %v558_v31 }
 0x1bb   :  { %v567_v47 = vsel %vm105_vm7, %v560_v42, %v559_v45  ;;  %vm576_vm7 = vcmask 15360   ;;  %v694_v42 = vld [vmem:[#allocation5 + $0x270] sm:$0xff]  ;;  %v709_v45 = vld [vmem:[#allocation5 + $0x2e8] sm:$0xff] }
 0x1bc   :  { %868 = vmatpush.msrb.mxu0 %v694_v42  ;;  %889 = vmatpush.msrb.mxu1 %v709_v45 }
 0x1be   :  { %869 = vmatpush.msrb.mxu0 %v693_v43  ;;  %890 = vmatpush.msrb.mxu1 %v708_v53  ;;  %v1088_v43 = vmov 1966171168   ;;  %v698_v53 = vld [vmem:[#allocation5 + $0x290] sm:$0xff] }
 0x1bf   :  { %v445_v45 = vunpack.c.l.s4 %v1088_v43 }
 0x1c0   :  { %v1286_v60 = vpop.permute.xlu2 %546  ;;  %870 = vmatpush.msrb.mxu0 %v692_v50  ;;  %v411_v50 = vperm.slane %v1266_v8, %v1213_v16 }
 0x1c1   :  { %v563_v58 = vperm.slane %v1286_v60, %v558_v31 }
 0x1c8   :  { %v550_v21 = vpop.permute.xlu2 %549 }
 0x1c9   :  { %v564_v61 = vperm.slane %v550_v21, %v558_v31  ;;  %v650_v21 = vld [vmem:[#allocation5 + $0x110] sm:$0xff] }
 0x1ca   :  { %840 = vmatpush.msra.mxu2 %v650_v21  ;;  %v734_v21 = vld [vmem:[#allocation5 + $0x3b0] sm:$0xff] }
 0x1cc   :  { %841 = vmatpush.msra.mxu2 %v649_v51  ;;  %v733_v51 = vld [vmem:[#allocation5 + $0x3a8] sm:$0xff] }
 0x1ce   :  { %842 = vmatpush.msra.mxu2 %v648_v30  ;;  %v732_v30 = vld [vmem:[#allocation5 + $0x3a0] sm:$0xff] }
 0x1d0   :  { %v553_v48 = vpop.permute.xlu2 %552  ;;  %v541_v49 = vpop.permute.xlu0 %540  ;;  %907 = vmatpush.msrb.mxu2 %v727_v40  ;;  %v699_v40 = vld [vmem:[#allocation5 + $0x298] sm:$0xff] }
 0x1d1   :  { %v544_v54 = vpop.permute.xlu1 %543  ;;  %v561_v56 = vperm.slane %v541_v49, %v558_v31  ;;  %v565_v0 = vperm.slane %v553_v48, %v558_v31  ;;  %v725_v48 = vld [vmem:[#allocation5 + $0x368] sm:$0xff] }
 0x1d2   :  { %v562_v57 = vperm.slane %v544_v54, %v558_v31  ;;  %908 = vmatpush.msrb.mxu2 %v726_v39  ;;  %v741_v49 = vld [vmem:[#allocation5 + $0x3e8] sm:$0xff]  ;;  %v724_v54 = vld [vmem:[#allocation5 + $0x360] sm:$0xff]  ;;  %v731_v39 = vld [vmem:[#allocation5 + $0x398] sm:$0xff] }
 0x1d3   :  { %v568_v59 = vsel %vm93_vm1, %v561_v56, %v567_v47  ;;  %v740_v56 = vld [vmem:[#allocation5 + $0x3e0] sm:$0xff]  ;;  %v691_v47 = vld [vmem:[#allocation5 + $0x258] sm:$0xff] }
 0x1d4   :  { %v569_v46 = vsel %vm107_vm8, %v562_v57, %v568_v59  ;;  %909 = vmatpush.msrb.mxu2 %v725_v48  ;;  %v707_v57 = vld [vmem:[#allocation5 + $0x2d8] sm:$0xff]  ;;  %871 = vmatpush.msrb.mxu0 %v691_v47  ;;  %v403_v48 = vperm.slane %v1266_v8, %v1209_v14 }
 0x1d5   :  { %v570_v62 = vsel %vm97_vm3, %v563_v58, %v569_v46  ;;  %v723_v58 = vld [vmem:[#allocation5 + $0x358] sm:$0xff]  ;;  %891 = vmatpush.msrb.mxu1 %v707_v57  ;;  %v690_v46 = vld [vmem:[#allocation5 + $0x250] sm:$0xff]  ;;  %v681_v57 = vld [vmem:[#allocation5 + $0x208] sm:$0xff] }
 0x1d6   :  { %v571_v63 = vsel %vm111_vm10, %v564_v61, %v570_v62  ;;  %910 = vmatpush.msrb.mxu2 %v724_v54  ;;  %v739_v59 = vld [vmem:[#allocation5 + $0x3d8] sm:$0xff]  ;;  %v706_v61 = vld [vmem:[#allocation5 + $0x2d0] sm:$0xff]  ;;  %872 = vmatpush.msrb.mxu0 %v690_v46  ;;  %v729_v46 = vld [vmem:[#allocation5 + $0x388] sm:$0xff] }
 0x1d7   :  { %v572_v2 = vsel %vm99_vm4, %v565_v0, %v571_v63  ;;  %v722_v62 = vld [vmem:[#allocation5 + $0x350] sm:$0xff]  ;;  %892 = vmatpush.msrb.mxu1 %v706_v61  ;;  %v689_v0 = vld [vmem:[#allocation5 + $0x248] sm:$0xff]  ;;  %v680_v61 = vld [vmem:[#allocation5 + $0x200] sm:$0xff] }
 0x1d8   :  { %v556_v1 = vpop.permute.xlu2 %555  ;;  %911 = vmatpush.msrb.mxu2 %v723_v58  ;;  %v738_v63 = vld [vmem:[#allocation5 + $0x3d0] sm:$0xff]  ;;  %873 = vmatpush.msrb.mxu0 %v689_v0  ;;  %v697_v58 = vld [vmem:[#allocation5 + $0x288] sm:$0xff] }
 0x1d9   :  { %v566_v5 = vperm.slane %v556_v1, %v558_v31  ;;  %v664_v31 = vld [vmem:[#allocation5 + $0x180] sm:$0xff]  ;;  %v705_v1 = vld [vmem:[#allocation5 + $0x2c8] sm:$0xff]  ;;  %v714_v54 = vld [vmem:[#allocation5 + $0x310] sm:$0xff] }
 0x1da   :  { %862 = vmatpush.msra.mxu3 %v664_v31  ;;  %912 = vmatpush.msrb.mxu2 %v722_v62  ;;  %v696_v62 = vld [vmem:[#allocation5 + $0x280] sm:$0xff] }
 0x1db   :  { %v574_v4 = vsel %vm573_vm11, %v566_v5, %v572_v2  ;;  %v721_v5 = vld [vmem:[#allocation5 + $0x348] sm:$0xff]  ;;  %893 = vmatpush.msrb.mxu1 %v705_v1  ;;  %v712_v1 = vld [vmem:[#allocation5 + $0x300] sm:$0xff] }
 0x1dc   :  { %v577_v60 = vsel %vm576_vm7, %v574_v4, 0.0  ;;  %927 = vmatpush.msrb.mxu3 %v743_v41  ;;  %v737_v2 = vld [vmem:[#allocation5 + $0x3c8] sm:$0xff]  ;;  %v688_v4 = vld [vmem:[#allocation5 + $0x240] sm:$0xff]  ;;  %913 = vmatpush.msrb.mxu2 %v721_v5  ;;  %v399_v41 = vperm.slane %v1266_v8, %v1207_v13 }
 0x1dd   :  { %578 = vadd.xlane.f32.xlu1 %v577_v60  ;;  %v704_v60 = vld [vmem:[#allocation5 + $0x2c0] sm:$0xff]  ;;  %874 = vmatpush.msrb.mxu0 %v688_v4  ;;  %v437_v4 = vmul.f32 %v403_v48, %v1224_v24  ;;  %v427_v24 = vperm.slane %v1272_v28, %v1213_v16  ;;  %v988_v48 = vld [vmem:[%s1343_s2] ss:$0 sm:$0xff] }
 0x1de   :  { %928 = vmatpush.msrb.mxu3 %v742_v44  ;;  %894 = vmatpush.msrb.mxu1 %v704_v60  ;;  %v682_v44 = vld [vmem:[#allocation5 + $0x210] sm:$0xff]  ;;  %v728_v5 = vld [vmem:[#allocation5 + $0x380] sm:$0xff] }
 0x1df   :  { %914 = vmatpush.msrb.mxu2 %v720_v6  ;;  %875 = vmatpush.msrb.mxu0 %v687_v10  ;;  %v439_v6 = vmul.f32 %v411_v50, %v1230_v26 }
 0x1e0   :  { %929 = vmatpush.msrb.mxu3 %v741_v49  ;;  %895 = vmatpush.msrb.mxu1 %v703_v11  ;;  %v407_v49 = vperm.slane %v1266_v8, %v1211_v15  ;;  %v415_v8 = vperm.slane %v1272_v28, %v1207_v13  ;;  %v423_v13 = vperm.slane %v1272_v28, %v1211_v15 }
 0x1e1   :  { %915 = vmatpush.msrb.mxu2 %v719_v17  ;;  %876 = vmatpush.msrb.mxu0 %v686_v19 }
 0x1e2   :  { %930 = vmatpush.msrb.mxu3 %v740_v56  ;;  %896 = vmatpush.msrb.mxu1 %v702_v12  ;;  %v730_v56 = vld [vmem:[#allocation5 + $0x390] sm:$0xff]  ;;  %v438_v60 = vmul.f32 %v407_v49, %v1227_v25  ;;  %v440_v25 = vmul.f32 %v415_v8, %v1246_v33 }
 0x1e3   :  { %916 = vmatpush.msrb.mxu2 %v718_v20  ;;  %877 = vmatpush.msrb.mxu0 %v685_v22  ;;  %v443_v22 = vmul.f32 %v427_v24, %v1254_v36 }
 0x1e4   :  { %931 = vmatpush.msrb.mxu3 %v739_v59  ;;  %897 = vmatpush.msrb.mxu1 %v701_v27  ;;  %v713_v59 = vld [vmem:[#allocation5 + $0x308] sm:$0xff] }
 0x1e5   :  { %917 = vmatpush.msrb.mxu2 %v717_v29  ;;  %878 = vmatpush.msrb.mxu0 %v684_v52 }
 0x1e6   :  { %932 = vmatpush.msrb.mxu3 %v738_v63  ;;  %898 = vmatpush.msrb.mxu1 %v700_v55  ;;  %v436_v63 = vmul.f32 %v399_v41, %v1221_v23  ;;  %v419_v23 = vperm.slane %v1272_v28, %v1209_v14 }
 0x1e7   :  { %918 = vmatpush.msrb.mxu2 %v716_v3  ;;  %879 = vmatpush.msrb.mxu0 %v683_v37 }
 0x1e8   :  { %933 = vmatpush.msrb.mxu3 %v737_v2  ;;  %899 = vmatpush.msrb.mxu1 %v699_v40  ;;  %v446_v2 = vunpack.c.0.s8 %v445_v45 }
 0x1e9   :  { %919 = vmatpush.msrb.mxu2 %v715_v38  ;;  %880 = vmatpush.msrb.mxu0 %v682_v44 }
 0x1ea   :  { %934 = vmatpush.msrb.mxu3 %v736_v7  ;;  %900 = vmatpush.msrb.mxu1 %v698_v53  ;;  %v447_v26 = vperm.slane %v436_v63, %v446_v2  ;;  %v451_v15 = vperm.slane %v437_v4, %v446_v2  ;;  %v455_v11 = vperm.slane %v438_v60, %v446_v2 }
 0x1eb   :  { %920 = vmatpush.msrb.mxu2 %v714_v54  ;;  %881 = vmatpush.msrb.mxu0 %v681_v57  ;;  %v459_v17 = vperm.slane %v439_v6, %v446_v2  ;;  %v463_v16 = vperm.slane %v440_v25, %v446_v2 }
 0x1ec   :  { %935 = vmatpush.msrb.mxu3 %v735_v18  ;;  %901 = vmatpush.msrb.mxu1 %v697_v58  ;;  %v442_v18 = vmul.f32 %v423_v13, %v1252_v35  ;;  %v475_v35 = vperm.slane %v443_v22, %v446_v2 }
 0x1ed   :  { %921 = vmatpush.msrb.mxu2 %v713_v59  ;;  %882 = vmatpush.msrb.mxu0 %v680_v61 }
 0x1ee   :  { %936 = vmatpush.msrb.mxu3 %v734_v21  ;;  %902 = vmatpush.msrb.mxu1 %v696_v62 }
 0x1ef   :  { %922 = vmatpush.msrb.mxu2 %v712_v1 }
 0x1f0   :  { %937 = vmatpush.msrb.mxu3 %v733_v51 }
 0x1f2   :  { %938 = vmatpush.msrb.mxu3 %v732_v30 }
 0x1f4   :  { %939 = vmatpush.msrb.mxu3 %v731_v39 }
 0x1f6   :  { %940 = vmatpush.msrb.mxu3 %v730_v56 }
 0x1f8   :  { %941 = vmatpush.msrb.mxu3 %v729_v46 }
 0x1fa   :  { %942 = vmatpush.msrb.mxu3 %v728_v5 }
 0x250   :  { %v1297_v9 = vpop.xlane.xlu1 %578 }
 0x251   :  { %995 = vrsqrt.f32 %v1297_v9  ;;  %vm586_vm3 = vweird.f32 %v1297_v9 }
 0x257   :  { %v1300_v31 = vpop.eup %995 }
 0x258   :  { %v581_v32 = vmul.f32 %v1300_v31, %v1297_v9  ;;  %vm587_vm1 = vweird.f32 %v1300_v31  ;;  %v441_v9 = vmul.f32 %v419_v23, %v1249_v34 }
 0x259   :  { %vm588_vm4 = vmor %vm586_vm3, %vm587_vm1 }
 0x25a   :  { %v582_v42 = vmul.f32 %v1300_v31, %v581_v32  ;;  %v467_v55 = vperm.slane %v441_v9, %v446_v2 }
 0x25c   :  { %v583_v47 = vmul.f32 0.5, %v582_v42 }
 0x25e   :  { %v584_v0 = vsub.f32 1.5, %v583_v47 }
 0x260   :  { %v585_v7 = vmul.f32 %v1300_v31, %v584_v0 }
 0x262   :  { %v589_v14 = vsel %vm588_vm4, %v1300_v31, %v585_v7  ;;  %v471_v31 = vperm.slane %v442_v18, %v446_v2 }
 0x263   :  { %v590_v10 = vmin.f32 %v589_v14, 1.0 }
 0x265   :  { %v592_v19 = vperm.slane %v590_v10, 0  ;;  %v593_v12 = vperm.slane %v590_v10, 1  ;;  %v594_v20 = vperm.slane %v590_v10, 2  ;;  %v595_v21 = vperm.slane %v590_v10, 3 }
 0x266   :  { %v596_v28 = vperm.slane %v590_v10, 4  ;;  %v597_v33 = vperm.slane %v590_v10, 5  ;;  %v598_v27 = vperm.slane %v590_v10, 6  ;;  %v599_v3 = vperm.slane %v590_v10, 7 }
 0x267   :  { %v608_v29 = vmul.f32 %v592_v19, %v447_v26  ;;  %v609_v51 = vmul.f32 %v593_v12, %v451_v15  ;;  %v610_v52 = vmul.f32 %v594_v20, %v455_v11  ;;  %v611_v30 = vmul.f32 %v595_v21, %v459_v17 }
 0x268   :  { %v612_v34 = vmul.f32 %v596_v28, %v463_v16  ;;  %v613_v32 = vmul.f32 %v597_v33, %v467_v55  ;;  %v614_v37 = vmul.f32 %v598_v27, %v471_v31  ;;  %v615_v40 = vmul.f32 %v599_v3, %v475_v35 }
 0x269   :  { %756 = vst [vmem:[#allocation1] ss:$9 sm:$0xff] %v608_v29 }
 0x26a   :  { %758 = vst [vmem:[#allocation1 + $0x1] ss:$9 sm:$0xff] %v609_v51 }
 0x26b   :  { %760 = vst [vmem:[#allocation1 + $0x2] ss:$9 sm:$0xff] %v610_v52 }
 0x26c   :  { %762 = vst [vmem:[#allocation1 + $0x3] ss:$9 sm:$0xff] %v611_v30 }
 0x26d   :  { %764 = vst [vmem:[#allocation1 + $0x4] ss:$9 sm:$0xff] %v612_v34 }
 0x26e   :  { %766 = vst [vmem:[#allocation1 + $0x5] ss:$9 sm:$0xff] %v613_v32 }
 0x26f   :  { %768 = vst [vmem:[#allocation1 + $0x6] ss:$9 sm:$0xff] %v614_v37 }
 0x270   :  { %770 = vst [vmem:[#allocation1 + $0x7] ss:$9 sm:$0xff] %v615_v40 }
 0x277   :  { %v771_v36 = vld [vmem:[#allocation1] sm:$0xff]  ;;  %v772_v41 = vld [vmem:[#allocation1 + $0x9] sm:$0xff]  ;;  %v773_v42 = vld [vmem:[#allocation1 + $0x12] sm:$0xff] }
 0x278   :  { %803 = vmatmul.f32.vlgmr.msra.gmra.mxu0 %v771_v36  ;;  %823 = vmatmul.f32.vlgmr.msra.gmra.mxu1 %v772_v41  ;;  %v774_v38 = vld [vmem:[#allocation1 + $0x1b] sm:$0xff]  ;;  %v775_v39 = vld [vmem:[#allocation1 + $0x24] sm:$0xff]  ;;  %v776_v44 = vld [vmem:[#allocation1 + $0x2d] sm:$0xff] }
 0x279   :  { %843 = vmatmul.f32.vlgmr.msra.gmra.mxu2 %v773_v42  ;;  %863 = vmatmul.f32.vlgmr.msra.gmra.mxu3 %v774_v38  ;;  %v777_v43 = vld [vmem:[#allocation1 + $0x36] sm:$0xff]  ;;  %v778_v45 = vld [vmem:[#allocation1 + $0x3f] sm:$0xff] }
 0x280   :  { %883 = vmatmul.f32.vlgmr.msrb.gmra.mxu0 %v775_v39  ;;  %903 = vmatmul.f32.vlgmr.msrb.gmra.mxu1 %v776_v44 }
 0x281   :  { %923 = vmatmul.f32.vlgmr.msrb.gmra.mxu2 %v777_v43  ;;  %943 = vmatmul.f32.vlgmr.msrb.gmra.mxu3 %v778_v45 }
 0x2f5   :  { %v804_v49 = vpop.f32.mrf.mxu0  ;;  %v824_v53 = vpop.f32.mrf.mxu1 }
 0x2f6   :  { %v805_v50 = vadd.f32 %v988_v48, %v804_v49 }
 0x2f8   :  { %v825_v54 = vadd.f32 %v824_v53, %v805_v50 }
 0x2fc   :  { %v844_v56 = vpop.f32.mrf.mxu2  ;;  %v864_v47 = vpop.f32.mrf.mxu3 }
 0x2fd   :  { %v845_v57 = vadd.f32 %v844_v56, %v825_v54  ;;  %v884_v59 = vpop.f32.mrf.mxu0  ;;  %v904_v61 = vpop.f32.mrf.mxu1 }
 0x2ff   :  { %v865_v58 = vadd.f32 %v864_v47, %v845_v57 }
 0x301   :  { %v885_v46 = vadd.f32 %v884_v59, %v865_v58 }
 0x303   :  { %v905_v62 = vadd.f32 %v904_v61, %v885_v46 }
 0x304   :  { %v924_v63 = vpop.f32.mrf.mxu2  ;;  %v944_v0 = vpop.f32.mrf.mxu3 }
 0x305   :  { %v925_v8 = vadd.f32 %v924_v63, %v905_v62 }
 0x307   :  { %v945_v1 = vadd.f32 %v944_v0, %v925_v8 }
 0x309   :  { %947 = vst [vmem:[#allocation7] sm:$0xff] %v945_v1 }
 0x30a   :  { %951 = vsyncadd [#allocation4], 96  ;;  %s954_s27 = sshll.u32 %s1344_s3, 4  ;;  %s1089_s28 = smov [#allocation7]   ;;  %s955_s27 = int_to_ptr.hbm [resolvable:$true] %s954_s27 }
 0x30b   :  { %s952_s29 = sshll.u32 %s1089_s28, 4  ;;  %s1090_s30 = smov 32   ;;  %s953_s29 = int_to_ptr.vmem [resolvable:$true] %s952_s29 }
 0x30c   :  { %s1091_s4 = smov 2  }
 0x30d   :  { %960 = dma.vmem_to_hbm [thread:$0]  %s953_s29, 32, %s955_s27, [#allocation4], %s1090_s30, %s1090_s30, %s1091_s4  }
 0x30e   :  { %1073 = dma.done.wait [#allocation4], 128  }
 0x30f   :  { %1074 = vsyncadd [#allocation4], 4294967168 }
 0x310   :  { %965 = vsyncpa [#allocation3], 1 }
 0x311   :  { %966 = vsyncpa [#allocation6], 1 }
 0x312   :  { %967 = vsyncpa [#allocation4], 1 }

</bundles_post_ra>
